<compile_context>
chip_gen: v7x
topology: tpu7x:2x2x1
jax: 0.10.0
libtpu: 0.0.40
codegen_flags: <defaults>
</compile_context>

<pallas_src>
import functools
import math

import jax
import jax.numpy as jnp
from jax.experimental import pallas as pl
from jax.experimental.pallas import tpu as pltpu


def atomic_encoder_kernel(x_ref, bias_ref, pool_ref,
                          w1_ref, b1_ref, w2_ref, b2_ref, pos_ref,
                          wqkv_ref, bqkv_ref, wo_ref, bo_ref,
                          gamma_ref, beta_ref,
                          out_ref, o_scratch,
                          *, b_blk, n_atoms, num_heads, head_dim):
    N, H, hd = n_atoms, num_heads, head_dim
    D = w2_ref.shape[1]
    R = b_blk * N

    x = x_ref[...]                                            # (R, F) flat batch block

    # --- atom_encoder: Linear -> ReLU -> Dropout(eval=id) -> Linear (+pos) ---
    h1 = jnp.dot(x, w1_ref[...], preferred_element_type=jnp.float32) + b1_ref[...]
    h1 = jnp.maximum(h1, 0.0)
    emb = (jnp.dot(h1, w2_ref[...], preferred_element_type=jnp.float32)
           + b2_ref[...] + pos_ref[...])                      # pos pre-tiled to (R, D)

    # --- fused QKV projection (1/sqrt(hd) already folded into the Q columns) ---
    qkv = jnp.dot(emb, wqkv_ref[...], preferred_element_type=jnp.float32) + bqkv_ref[...]
    q = qkv[:, :D].reshape(b_blk, N, D)
    k = qkv[:, D:2 * D].reshape(b_blk, N, D)
    v = qkv[:, 2 * D:].reshape(b_blk, N, D)
    bias = bias_ref[...]                                      # (b_blk, 1, N) additive key mask

    # --- attention: static loop over heads, batched 3-D matmuls over the block ---
    for h in range(H):
        sl = slice(h * hd, (h + 1) * hd)
        s = jnp.einsum('bqd,bkd->bqk', q[:, :, sl], k[:, :, sl],
                       preferred_element_type=jnp.float32)    # (b_blk, N, N)
        s = s + bias                                          # key-padding mask (additive)
        s = s - jnp.max(s, axis=-1, keepdims=True)
        p = jnp.exp(s)
        p = p / jnp.sum(p, axis=-1, keepdims=True)            # exact division (fp32 semantics)
        # TODO(synk): attention dropout (p=0.1) omitted -- eval-mode semantics.
        o_scratch[:, :, sl] = jnp.einsum('bqk,bkd->bqd', p, v[:, :, sl],
                                         preferred_element_type=jnp.float32)

    # --- output projection + LayerNorm(embed_dim), eps=1e-5 ---
    o = o_scratch[...].reshape(R, D)
    attn_out = jnp.dot(o, wo_ref[...], preferred_element_type=jnp.float32) + bo_ref[...]
    mu = jnp.mean(attn_out, axis=-1, keepdims=True)
    xc = attn_out - mu
    var = jnp.mean(xc * xc, axis=-1, keepdims=True)
    y = xc * jax.lax.rsqrt(var + 1e-5) * gamma_ref[...] + beta_ref[...]

    # --- masked mean pooling: one block-diagonal (b_blk, R) x (R, D) matmul ---
    pm = pool_ref[0]                                          # (b_blk, R)
    pooled = jnp.dot(pm, y, preferred_element_type=jnp.float32)        # (b_blk, D)
    counts = jnp.sum(pm, axis=-1, keepdims=True)              # (b_blk, 1)
    pooled = pooled / (counts + 1e-8)

    pad = out_ref.shape[-1] - D                               # lane-dense (>=128) output slab
    if pad:
        pooled = jnp.concatenate(
            [pooled, jnp.zeros((b_blk, pad), jnp.float32)], axis=1)
    out_ref[0] = pooled


def _const_spec(shape):
    """Grid-invariant operand: full block, single-buffered (no double-buffered VMEM copy)."""
    nd = len(shape)
    idx = lambda g, _nd=nd: (0,) * _nd
    try:
        return pl.BlockSpec(shape, idx, pipeline_mode=pl.Buffered(1))
    except TypeError:   # older jax without pipeline_mode -> default buffering
        return pl.BlockSpec(shape, idx)


def _pick_batch_block(B, N):
    """Largest divisor of B such that (a) each grid step carries at most ~256 rows
    (fills the MXU M dim, amortizes ~0.35us/step overhead) and (b) there are at
    least two grid steps when B >= 2 (both v7x TensorCores get work)."""
    cap = max(1, min(B, 256 // max(N, 1)))
    if B >= 2:
        cap = min(cap, B // 2)
    cap = max(cap, 1)
    b_blk = 1
    for d in range(1, cap + 1):
        if B % d == 0:
            b_blk = d
    return b_blk


def _vmem_limit_bytes(b_blk, n, d, f, heads, out_cols):
    """Explicit VMEM budget: double-buffered per-step blocks + single-buffered
    weights + intermediates, with 2x headroom, clamped to a range that is safe
    on v5e/v6e (128 MiB) and v7x (64 MiB)."""
    r = b_blk * n
    per_step = (2 * (r * f + b_blk * n + b_blk * r + b_blk * out_cols)   # pipelined blocks
                + (f + 4 * d + r) * d + 8 * d                            # weights + pos
                + 6 * r * d + 3 * b_blk * n * n + r * d)                 # intermediates + scratch
    est = 4 * per_step
    return int(min(max(2 * est + (4 << 20), 32 << 20), 48 << 20))


@functools.partial(jax.jit, static_argnames=("num_heads",))
def atomic_level_encoder(atom_features, atom_mask, params, num_heads=8):
    B, N, F = atom_features.shape
    D = params["w2"].shape[1]
    head_dim = D // num_heads
    f32 = jnp.float32

    b_blk = _pick_batch_block(B, N)
    num_blocks = B // b_blk
    R = b_blk * N
    out_cols = max(128, -(-D // 128) * 128)               # lane-dense output slab width

    # --- wrapper-side prep (hoisted out of the kernel, fused under jit) ---
    x2d = atom_features.astype(f32).reshape(B * N, F)
    mask_f = atom_mask.astype(f32)                         # (B, N)
    bias = ((mask_f - 1.0) * 1e30).reshape(B, 1, N)        # 0 valid / -1e30 padded
    eye = jnp.eye(b_blk, dtype=f32)
    pool = (mask_f.reshape(num_blocks, b_blk, 1, N) * eye[None, :, :, None]
            ).reshape(num_blocks, b_blk, R)                # block-diagonal pooling matrix
    pos = jnp.tile(params["pos"][:N].astype(f32), (b_blk, 1))          # (R, D)
    scale = 1.0 / math.sqrt(head_dim)
    wqkv = jnp.concatenate([params["wq"] * scale, params["wk"], params["wv"]], axis=1)
    bqkv = jnp.concatenate([params["bq"] * scale, params["bk"], params["bv"]], axis=1)

    kernel = functools.partial(atomic_encoder_kernel, b_blk=b_blk, n_atoms=N,
                               num_heads=num_heads, head_dim=head_dim)

    out = pl.pallas_call(
        kernel,
        out_shape=jax.ShapeDtypeStruct((num_blocks, b_blk, out_cols), f32),
        grid=(num_blocks,),
        in_specs=[
            pl.BlockSpec((R, F), lambda g: (g, 0)),               # flat activations
            pl.BlockSpec((b_blk, 1, N), lambda g: (g, 0, 0)),     # additive key mask
            pl.BlockSpec((1, b_blk, R), lambda g: (g, 0, 0)),     # pooling matrix
            _const_spec(params["w1"].shape), _const_spec(params["b1"].shape),
            _const_spec(params["w2"].shape), _const_spec(params["b2"].shape),
            _const_spec(pos.shape),
            _const_spec(wqkv.shape), _const_spec(bqkv.shape),
            _const_spec(params["wo"].shape), _const_spec(params["bo"].shape),
            _const_spec(params["gamma"].shape), _const_spec(params["beta"].shape),
        ],
        out_specs=pl.BlockSpec((1, b_blk, out_cols), lambda g: (g, 0, 0)),
        scratch_shapes=[pltpu.VMEM((b_blk, N, D), f32)],
        compiler_params=pltpu.CompilerParams(
            dimension_semantics=("parallel",),
            vmem_limit_bytes=_vmem_limit_bytes(b_blk, N, D, F, num_heads, out_cols)),
    )(x2d, bias, pool,
      params["w1"], params["b1"], params["w2"], params["b2"], pos,
      wqkv, bqkv, params["wo"], params["bo"],
      params["gamma"], params["beta"])
    return out.reshape(B, out_cols)[:, :D]


def reference(atom_features, atom_mask, params, num_heads=8):
    """Pure-JAX reference mirroring the PyTorch forward (eval mode)."""
    x = atom_features.astype(jnp.float32)
    B, N, _ = x.shape
    h1 = jax.nn.relu(x @ params["w1"] + params["b1"])
    emb = h1 @ params["w2"] + params["b2"] + params["pos"][None, :N]
    q = emb @ params["wq"] + params["bq"]
    k = emb @ params["wk"] + params["bk"]
    v = emb @ params["wv"] + params["bv"]
    D = emb.shape[-1]
    hd = D // num_heads
    qh = q.reshape(B, N, num_heads, hd)
    kh = k.reshape(B, N, num_heads, hd)
    vh = v.reshape(B, N, num_heads, hd)
    s = jnp.einsum("bqhd,bkhd->bhqk", qh, kh) / math.sqrt(hd)
    valid = atom_mask.astype(bool)[:, None, None, :]
    s = jnp.where(valid, s, -1e30)
    p = jax.nn.softmax(s, axis=-1)
    o = jnp.einsum("bhqk,bkhd->bqhd", p, vh).reshape(B, N, D)
    o = o @ params["wo"] + params["bo"]
    mu = o.mean(-1, keepdims=True)
    var = ((o - mu) ** 2).mean(-1, keepdims=True)
    y = (o - mu) / jnp.sqrt(var + 1e-5) * params["gamma"] + params["beta"]
    m = atom_mask.astype(jnp.float32)[..., None]
    return (y * m).sum(1) / (m.sum(1) + 1e-8)


def init_params(key, embed_dim, max_atoms, atom_feature_dim=9):
    ks = jax.random.split(key, 10)
    d2 = embed_dim // 2
    return {
        "w1": 0.1 * jax.random.normal(ks[0], (atom_feature_dim, d2), jnp.float32),
        "b1": 0.01 * jax.random.normal(ks[1], (1, d2), jnp.float32),
        "w2": 0.1 * jax.random.normal(ks[2], (d2, embed_dim), jnp.float32),
        "b2": 0.01 * jax.random.normal(ks[3], (1, embed_dim), jnp.float32),
        "pos": 0.1 * jax.random.normal(ks[4], (max_atoms, embed_dim), jnp.float32),
        "wq": 0.1 * jax.random.normal(ks[5], (embed_dim, embed_dim), jnp.float32),
        "wk": 0.1 * jax.random.normal(ks[6], (embed_dim, embed_dim), jnp.float32),
        "wv": 0.1 * jax.random.normal(ks[7], (embed_dim, embed_dim), jnp.float32),
        "wo": 0.1 * jax.random.normal(ks[8], (embed_dim, embed_dim), jnp.float32),
        "bq": jnp.zeros((1, embed_dim), jnp.float32),
        "bk": jnp.zeros((1, embed_dim), jnp.float32),
        "bv": jnp.zeros((1, embed_dim), jnp.float32),
        "bo": 0.01 * jax.random.normal(ks[9], (1, embed_dim), jnp.float32),
        "gamma": jnp.ones((1, embed_dim), jnp.float32),
        "beta": jnp.zeros((1, embed_dim), jnp.float32),
    }


if __name__ == "__main__":
    B, N, F = 2, 16, 9
    embed_dim, max_atoms, num_heads = 64, 16, 8

    key = jax.random.PRNGKey(0)
    k_feat, k_par = jax.random.split(key)
    params = init_params(k_par, embed_dim, max_atoms, F)

    atom_features = jax.random.normal(k_feat, (B, N, F), jnp.float32)
    # batch 0: all atoms valid; batch 1: first 10 atoms valid (rest padded)
    lengths = jnp.array([[N], [10]])
    atom_mask = (jnp.arange(N)[None, :] < lengths).astype(jnp.float32)

    out = atomic_level_encoder(atom_features, atom_mask, params, num_heads=num_heads)
    out = jax.block_until_ready(out)

    ref = reference(atom_features, atom_mask, params, num_heads)
    assert out.shape == (B, embed_dim)
    assert jnp.allclose(out, ref, atol=2e-3, rtol=2e-3), "mismatch vs JAX reference"

    print("KERNEL_OK")
</pallas_src>

<mosaic_0001>
module attributes {stable_mosaic.version = 11 : i64} {
  func.func @atomic_encoder_kernel(%arg0: i32, %arg1: memref<16x9xf32, #tpu.memory_space<vmem>>, %arg2: memref<1x1x16xf32, #tpu.memory_space<vmem>>, %arg3: memref<1x1x16xf32, #tpu.memory_space<vmem>>, %arg4: memref<9x32xf32, #tpu.memory_space<vmem>>, %arg5: memref<1x32xf32, #tpu.memory_space<vmem>>, %arg6: memref<32x64xf32, #tpu.memory_space<vmem>>, %arg7: memref<1x64xf32, #tpu.memory_space<vmem>>, %arg8: memref<16x64xf32, #tpu.memory_space<vmem>>, %arg9: memref<64x192xf32, #tpu.memory_space<vmem>>, %arg10: memref<1x192xf32, #tpu.memory_space<vmem>>, %arg11: memref<64x64xf32, #tpu.memory_space<vmem>>, %arg12: memref<1x64xf32, #tpu.memory_space<vmem>>, %arg13: memref<1x64xf32, #tpu.memory_space<vmem>>, %arg14: memref<1x64xf32, #tpu.memory_space<vmem>>, %arg15: memref<1x1x128xf32, #tpu.memory_space<vmem>>, %arg16: memref<1x16x64xf32, #tpu.memory_space<vmem>>) attributes {dimension_semantics = [#tpu.dimension_semantics<parallel>], iteration_bounds = array<i64: 2>, scalar_prefetch = 0 : i64, scratch_operands = 1 : i64, tpu.core_type = #tpu.core_type<tc>, window_params = [{transform_indices = @transform_0, window_bounds = array<i64: 16, 9>}, {transform_indices = @transform_1, window_bounds = array<i64: 1, 1, 16>}, {transform_indices = @transform_2, window_bounds = array<i64: 1, 1, 16>}, {pipeline_mode = #tpu.pipeline_mode<synchronous>, transform_indices = @transform_3, window_bounds = array<i64: 9, 32>}, {pipeline_mode = #tpu.pipeline_mode<synchronous>, transform_indices = @transform_4, window_bounds = array<i64: 1, 32>}, {pipeline_mode = #tpu.pipeline_mode<synchronous>, transform_indices = @transform_5, window_bounds = array<i64: 32, 64>}, {pipeline_mode = #tpu.pipeline_mode<synchronous>, transform_indices = @transform_6, window_bounds = array<i64: 1, 64>}, {pipeline_mode = #tpu.pipeline_mode<synchronous>, transform_indices = @transform_7, window_bounds = array<i64: 16, 64>}, {pipeline_mode = #tpu.pipeline_mode<synchronous>, transform_indices = @transform_8, window_bounds = array<i64: 64, 192>}, {pipeline_mode = #tpu.pipeline_mode<synchronous>, transform_indices = @transform_9, window_bounds = array<i64: 1, 192>}, {pipeline_mode = #tpu.pipeline_mode<synchronous>, transform_indices = @transform_10, window_bounds = array<i64: 64, 64>}, {pipeline_mode = #tpu.pipeline_mode<synchronous>, transform_indices = @transform_11, window_bounds = array<i64: 1, 64>}, {pipeline_mode = #tpu.pipeline_mode<synchronous>, transform_indices = @transform_12, window_bounds = array<i64: 1, 64>}, {pipeline_mode = #tpu.pipeline_mode<synchronous>, transform_indices = @transform_13, window_bounds = array<i64: 1, 64>}, {transform_indices = @transform_14, window_bounds = array<i64: 1, 1, 128>}]} {
    %c0 = arith.constant 0 : index
    %c0_0 = arith.constant 0 : index
    %0 = vector.load %arg1[%c0, %c0_0] : memref<16x9xf32, #tpu.memory_space<vmem>>, vector<16x9xf32>
    %c0_1 = arith.constant 0 : index
    %c0_2 = arith.constant 0 : index
    %1 = vector.load %arg4[%c0_1, %c0_2] : memref<9x32xf32, #tpu.memory_space<vmem>>, vector<9x32xf32>
    %cst = arith.constant dense<0.000000e+00> : vector<16x32xf32>
    %2 = tpu.matmul %0, %1, %cst {dimension_numbers = #tpu.dot_dimension_numbers<[1], [0], [0], [1], [0, 0, 1, 1], [], []>} : vector<16x9xf32>, vector<9x32xf32>, vector<16x32xf32> -> vector<16x32xf32>
    %c0_3 = arith.constant 0 : index
    %c0_4 = arith.constant 0 : index
    %3 = vector.load %arg5[%c0_3, %c0_4] : memref<1x32xf32, #tpu.memory_space<vmem>>, vector<1x32xf32>
    %4 = vector.broadcast %3 : vector<1x32xf32> to vector<16x32xf32>
    %5 = arith.addf %2, %4 : vector<16x32xf32>
    %cst_5 = arith.constant 0.000000e+00 : f32
    %6 = vector.broadcast %cst_5 : f32 to vector<16x32xf32>
    %7 = arith.maximumf %5, %6 : vector<16x32xf32>
    %c0_6 = arith.constant 0 : index
    %c0_7 = arith.constant 0 : index
    %8 = vector.load %arg6[%c0_6, %c0_7] : memref<32x64xf32, #tpu.memory_space<vmem>>, vector<32x64xf32>
    %cst_8 = arith.constant dense<0.000000e+00> : vector<16x64xf32>
    %9 = tpu.matmul %7, %8, %cst_8 {dimension_numbers = #tpu.dot_dimension_numbers<[1], [0], [0], [1], [0, 0, 1, 1], [], []>} : vector<16x32xf32>, vector<32x64xf32>, vector<16x64xf32> -> vector<16x64xf32>
    %c0_9 = arith.constant 0 : index
    %c0_10 = arith.constant 0 : index
    %10 = vector.load %arg7[%c0_9, %c0_10] : memref<1x64xf32, #tpu.memory_space<vmem>>, vector<1x64xf32>
    %11 = vector.broadcast %10 : vector<1x64xf32> to vector<16x64xf32>
    %12 = arith.addf %9, %11 : vector<16x64xf32>
    %c0_11 = arith.constant 0 : index
    %c0_12 = arith.constant 0 : index
    %13 = vector.load %arg8[%c0_11, %c0_12] : memref<16x64xf32, #tpu.memory_space<vmem>>, vector<16x64xf32>
    %14 = arith.addf %12, %13 : vector<16x64xf32>
    %c0_13 = arith.constant 0 : index
    %c0_14 = arith.constant 0 : index
    %15 = vector.load %arg9[%c0_13, %c0_14] : memref<64x192xf32, #tpu.memory_space<vmem>>, vector<64x192xf32>
    %cst_15 = arith.constant dense<0.000000e+00> : vector<16x192xf32>
    %16 = tpu.matmul %14, %15, %cst_15 {dimension_numbers = #tpu.dot_dimension_numbers<[1], [0], [0], [1], [0, 0, 1, 1], [], []>} : vector<16x64xf32>, vector<64x192xf32>, vector<16x192xf32> -> vector<16x192xf32>
    %c0_16 = arith.constant 0 : index
    %c0_17 = arith.constant 0 : index
    %17 = vector.load %arg10[%c0_16, %c0_17] : memref<1x192xf32, #tpu.memory_space<vmem>>, vector<1x192xf32>
    %18 = vector.broadcast %17 : vector<1x192xf32> to vector<16x192xf32>
    %19 = arith.addf %16, %18 : vector<16x192xf32>
    %20 = vector.extract_strided_slice %19 {offsets = [0, 0], sizes = [16, 64], strides = [1, 1]} : vector<16x192xf32> to vector<16x64xf32>
    %21 = vector.shape_cast %20 : vector<16x64xf32> to vector<1x16x64xf32>
    %22 = vector.extract_strided_slice %19 {offsets = [0, 64], sizes = [16, 64], strides = [1, 1]} : vector<16x192xf32> to vector<16x64xf32>
    %23 = vector.shape_cast %22 : vector<16x64xf32> to vector<1x16x64xf32>
    %24 = vector.extract_strided_slice %19 {offsets = [0, 128], sizes = [16, 64], strides = [1, 1]} : vector<16x192xf32> to vector<16x64xf32>
    %25 = vector.shape_cast %24 : vector<16x64xf32> to vector<1x16x64xf32>
    %c0_18 = arith.constant 0 : index
    %c0_19 = arith.constant 0 : index
    %c0_20 = arith.constant 0 : index
    %26 = vector.load %arg2[%c0_18, %c0_19, %c0_20] : memref<1x1x16xf32, #tpu.memory_space<vmem>>, vector<1x1x16xf32>
    %27 = vector.extract_strided_slice %21 {offsets = [0, 0, 0], sizes = [1, 16, 8], strides = [1, 1, 1]} : vector<1x16x64xf32> to vector<1x16x8xf32>
    %28 = vector.extract_strided_slice %23 {offsets = [0, 0, 0], sizes = [1, 16, 8], strides = [1, 1, 1]} : vector<1x16x64xf32> to vector<1x16x8xf32>
    "tpu.trace_start"() <{level = 10 : i32, message = "bqd,bkd->bqk"}> : () -> ()
    %cst_21 = arith.constant dense<0.000000e+00> : vector<1x16x16xf32>
    %29 = tpu.matmul %27, %28, %cst_21 {dimension_numbers = #tpu.dot_dimension_numbers<[2], [2], [1], [1], [0, 0, 0, 1, 1, 1], [0], [0]>} : vector<1x16x8xf32>, vector<1x16x8xf32>, vector<1x16x16xf32> -> vector<1x16x16xf32>
    "tpu.trace_stop"() : () -> ()
    %30 = vector.broadcast %26 : vector<1x1x16xf32> to vector<1x16x16xf32>
    %31 = arith.addf %29, %30 : vector<1x16x16xf32>
    %cst_22 = arith.constant dense<0xFF800000> : vector<1x16xf32>
    %32 = vector.multi_reduction <maximumf>, %31, %cst_22 [2] : vector<1x16x16xf32> to vector<1x16xf32>
    %33 = vector.shape_cast %32 : vector<1x16xf32> to vector<1x16x1xf32>
    %34 = vector.broadcast %33 : vector<1x16x1xf32> to vector<1x16x16xf32>
    %35 = arith.subf %31, %34 : vector<1x16x16xf32>
    %36 = math.exp %35 : vector<1x16x16xf32>
    %cst_23 = arith.constant dense<0.000000e+00> : vector<1x16xf32>
    %37 = vector.multi_reduction <add>, %36, %cst_23 [2] : vector<1x16x16xf32> to vector<1x16xf32>
    %38 = vector.shape_cast %37 : vector<1x16xf32> to vector<1x16x1xf32>
    %39 = vector.broadcast %38 : vector<1x16x1xf32> to vector<1x16x16xf32>
    %40 = arith.divf %36, %39 : vector<1x16x16xf32>
    %41 = vector.extract_strided_slice %25 {offsets = [0, 0, 0], sizes = [1, 16, 8], strides = [1, 1, 1]} : vector<1x16x64xf32> to vector<1x16x8xf32>
    "tpu.trace_start"() <{level = 10 : i32, message = "bqk,bkd->bqd"}> : () -> ()
    %cst_24 = arith.constant dense<0.000000e+00> : vector<1x16x8xf32>
    %42 = tpu.matmul %40, %41, %cst_24 {dimension_numbers = #tpu.dot_dimension_numbers<[2], [1], [1], [2], [0, 0, 0, 1, 1, 2], [0], [0]>} : vector<1x16x16xf32>, vector<1x16x8xf32>, vector<1x16x8xf32> -> vector<1x16x8xf32>
    "tpu.trace_stop"() : () -> ()
    %c0_25 = arith.constant 0 : index
    %c0_26 = arith.constant 0 : index
    %c0_27 = arith.constant 0 : index
    %43 = vector.load %arg16[%c0_25, %c0_26, %c0_27] : memref<1x16x64xf32, #tpu.memory_space<vmem>>, vector<1x16x8xf32>
    tpu.vector_store %arg16[%c0_25, %c0_26, %c0_27], %42 {strides = array<i32>} : memref<1x16x64xf32, #tpu.memory_space<vmem>>, vector<1x16x8xf32>,
    %44 = vector.extract_strided_slice %21 {offsets = [0, 0, 8], sizes = [1, 16, 8], strides = [1, 1, 1]} : vector<1x16x64xf32> to vector<1x16x8xf32>
    %45 = vector.extract_strided_slice %23 {offsets = [0, 0, 8], sizes = [1, 16, 8], strides = [1, 1, 1]} : vector<1x16x64xf32> to vector<1x16x8xf32>
    "tpu.trace_start"() <{level = 10 : i32, message = "bqd,bkd->bqk"}> : () -> ()
    %cst_28 = arith.constant dense<0.000000e+00> : vector<1x16x16xf32>
    %46 = tpu.matmul %44, %45, %cst_28 {dimension_numbers = #tpu.dot_dimension_numbers<[2], [2], [1], [1], [0, 0, 0, 1, 1, 1], [0], [0]>} : vector<1x16x8xf32>, vector<1x16x8xf32>, vector<1x16x16xf32> -> vector<1x16x16xf32>
    "tpu.trace_stop"() : () -> ()
    %47 = vector.broadcast %26 : vector<1x1x16xf32> to vector<1x16x16xf32>
    %48 = arith.addf %46, %47 : vector<1x16x16xf32>
    %cst_29 = arith.constant dense<0xFF800000> : vector<1x16xf32>
    %49 = vector.multi_reduction <maximumf>, %48, %cst_29 [2] : vector<1x16x16xf32> to vector<1x16xf32>
    %50 = vector.shape_cast %49 : vector<1x16xf32> to vector<1x16x1xf32>
    %51 = vector.broadcast %50 : vector<1x16x1xf32> to vector<1x16x16xf32>
    %52 = arith.subf %48, %51 : vector<1x16x16xf32>
    %53 = math.exp %52 : vector<1x16x16xf32>
    %cst_30 = arith.constant dense<0.000000e+00> : vector<1x16xf32>
    %54 = vector.multi_reduction <add>, %53, %cst_30 [2] : vector<1x16x16xf32> to vector<1x16xf32>
    %55 = vector.shape_cast %54 : vector<1x16xf32> to vector<1x16x1xf32>
    %56 = vector.broadcast %55 : vector<1x16x1xf32> to vector<1x16x16xf32>
    %57 = arith.divf %53, %56 : vector<1x16x16xf32>
    %58 = vector.extract_strided_slice %25 {offsets = [0, 0, 8], sizes = [1, 16, 8], strides = [1, 1, 1]} : vector<1x16x64xf32> to vector<1x16x8xf32>
    "tpu.trace_start"() <{level = 10 : i32, message = "bqk,bkd->bqd"}> : () -> ()
    %cst_31 = arith.constant dense<0.000000e+00> : vector<1x16x8xf32>
    %59 = tpu.matmul %57, %58, %cst_31 {dimension_numbers = #tpu.dot_dimension_numbers<[2], [1], [1], [2], [0, 0, 0, 1, 1, 2], [0], [0]>} : vector<1x16x16xf32>, vector<1x16x8xf32>, vector<1x16x8xf32> -> vector<1x16x8xf32>
    "tpu.trace_stop"() : () -> ()
    %c0_32 = arith.constant 0 : index
    %c0_33 = arith.constant 0 : index
    %c8 = arith.constant 8 : index
    %60 = vector.load %arg16[%c0_32, %c0_33, %c8] : memref<1x16x64xf32, #tpu.memory_space<vmem>>, vector<1x16x8xf32>
    tpu.vector_store %arg16[%c0_32, %c0_33, %c8], %59 {strides = array<i32>} : memref<1x16x64xf32, #tpu.memory_space<vmem>>, vector<1x16x8xf32>,
    %61 = vector.extract_strided_slice %21 {offsets = [0, 0, 16], sizes = [1, 16, 8], strides = [1, 1, 1]} : vector<1x16x64xf32> to vector<1x16x8xf32>
    %62 = vector.extract_strided_slice %23 {offsets = [0, 0, 16], sizes = [1, 16, 8], strides = [1, 1, 1]} : vector<1x16x64xf32> to vector<1x16x8xf32>
    "tpu.trace_start"() <{level = 10 : i32, message = "bqd,bkd->bqk"}> : () -> ()
    %cst_34 = arith.constant dense<0.000000e+00> : vector<1x16x16xf32>
    %63 = tpu.matmul %61, %62, %cst_34 {dimension_numbers = #tpu.dot_dimension_numbers<[2], [2], [1], [1], [0, 0, 0, 1, 1, 1], [0], [0]>} : vector<1x16x8xf32>, vector<1x16x8xf32>, vector<1x16x16xf32> -> vector<1x16x16xf32>
    "tpu.trace_stop"() : () -> ()
    %64 = vector.broadcast %26 : vector<1x1x16xf32> to vector<1x16x16xf32>
    %65 = arith.addf %63, %64 : vector<1x16x16xf32>
    %cst_35 = arith.constant dense<0xFF800000> : vector<1x16xf32>
    %66 = vector.multi_reduction <maximumf>, %65, %cst_35 [2] : vector<1x16x16xf32> to vector<1x16xf32>
    %67 = vector.shape_cast %66 : vector<1x16xf32> to vector<1x16x1xf32>
    %68 = vector.broadcast %67 : vector<1x16x1xf32> to vector<1x16x16xf32>
    %69 = arith.subf %65, %68 : vector<1x16x16xf32>
    %70 = math.exp %69 : vector<1x16x16xf32>
    %cst_36 = arith.constant dense<0.000000e+00> : vector<1x16xf32>
    %71 = vector.multi_reduction <add>, %70, %cst_36 [2] : vector<1x16x16xf32> to vector<1x16xf32>
    %72 = vector.shape_cast %71 : vector<1x16xf32> to vector<1x16x1xf32>
    %73 = vector.broadcast %72 : vector<1x16x1xf32> to vector<1x16x16xf32>
    %74 = arith.divf %70, %73 : vector<1x16x16xf32>
    %75 = vector.extract_strided_slice %25 {offsets = [0, 0, 16], sizes = [1, 16, 8], strides = [1, 1, 1]} : vector<1x16x64xf32> to vector<1x16x8xf32>
    "tpu.trace_start"() <{level = 10 : i32, message = "bqk,bkd->bqd"}> : () -> ()
    %cst_37 = arith.constant dense<0.000000e+00> : vector<1x16x8xf32>
    %76 = tpu.matmul %74, %75, %cst_37 {dimension_numbers = #tpu.dot_dimension_numbers<[2], [1], [1], [2], [0, 0, 0, 1, 1, 2], [0], [0]>} : vector<1x16x16xf32>, vector<1x16x8xf32>, vector<1x16x8xf32> -> vector<1x16x8xf32>
    "tpu.trace_stop"() : () -> ()
    %c0_38 = arith.constant 0 : index
    %c0_39 = arith.constant 0 : index
    %c16 = arith.constant 16 : index
    %77 = vector.load %arg16[%c0_38, %c0_39, %c16] : memref<1x16x64xf32, #tpu.memory_space<vmem>>, vector<1x16x8xf32>
    tpu.vector_store %arg16[%c0_38, %c0_39, %c16], %76 {strides = array<i32>} : memref<1x16x64xf32, #tpu.memory_space<vmem>>, vector<1x16x8xf32>,
    %78 = vector.extract_strided_slice %21 {offsets = [0, 0, 24], sizes = [1, 16, 8], strides = [1, 1, 1]} : vector<1x16x64xf32> to vector<1x16x8xf32>
    %79 = vector.extract_strided_slice %23 {offsets = [0, 0, 24], sizes = [1, 16, 8], strides = [1, 1, 1]} : vector<1x16x64xf32> to vector<1x16x8xf32>
    "tpu.trace_start"() <{level = 10 : i32, message = "bqd,bkd->bqk"}> : () -> ()
    %cst_40 = arith.constant dense<0.000000e+00> : vector<1x16x16xf32>
    %80 = tpu.matmul %78, %79, %cst_40 {dimension_numbers = #tpu.dot_dimension_numbers<[2], [2], [1], [1], [0, 0, 0, 1, 1, 1], [0], [0]>} : vector<1x16x8xf32>, vector<1x16x8xf32>, vector<1x16x16xf32> -> vector<1x16x16xf32>
    "tpu.trace_stop"() : () -> ()
    %81 = vector.broadcast %26 : vector<1x1x16xf32> to vector<1x16x16xf32>
    %82 = arith.addf %80, %81 : vector<1x16x16xf32>
    %cst_41 = arith.constant dense<0xFF800000> : vector<1x16xf32>
    %83 = vector.multi_reduction <maximumf>, %82, %cst_41 [2] : vector<1x16x16xf32> to vector<1x16xf32>
    %84 = vector.shape_cast %83 : vector<1x16xf32> to vector<1x16x1xf32>
    %85 = vector.broadcast %84 : vector<1x16x1xf32> to vector<1x16x16xf32>
    %86 = arith.subf %82, %85 : vector<1x16x16xf32>
    %87 = math.exp %86 : vector<1x16x16xf32>
    %cst_42 = arith.constant dense<0.000000e+00> : vector<1x16xf32>
    %88 = vector.multi_reduction <add>, %87, %cst_42 [2] : vector<1x16x16xf32> to vector<1x16xf32>
    %89 = vector.shape_cast %88 : vector<1x16xf32> to vector<1x16x1xf32>
    %90 = vector.broadcast %89 : vector<1x16x1xf32> to vector<1x16x16xf32>
    %91 = arith.divf %87, %90 : vector<1x16x16xf32>
    %92 = vector.extract_strided_slice %25 {offsets = [0, 0, 24], sizes = [1, 16, 8], strides = [1, 1, 1]} : vector<1x16x64xf32> to vector<1x16x8xf32>
    "tpu.trace_start"() <{level = 10 : i32, message = "bqk,bkd->bqd"}> : () -> ()
    %cst_43 = arith.constant dense<0.000000e+00> : vector<1x16x8xf32>
    %93 = tpu.matmul %91, %92, %cst_43 {dimension_numbers = #tpu.dot_dimension_numbers<[2], [1], [1], [2], [0, 0, 0, 1, 1, 2], [0], [0]>} : vector<1x16x16xf32>, vector<1x16x8xf32>, vector<1x16x8xf32> -> vector<1x16x8xf32>
    "tpu.trace_stop"() : () -> ()
    %c0_44 = arith.constant 0 : index
    %c0_45 = arith.constant 0 : index
    %c24 = arith.constant 24 : index
    %94 = vector.load %arg16[%c0_44, %c0_45, %c24] : memref<1x16x64xf32, #tpu.memory_space<vmem>>, vector<1x16x8xf32>
    tpu.vector_store %arg16[%c0_44, %c0_45, %c24], %93 {strides = array<i32>} : memref<1x16x64xf32, #tpu.memory_space<vmem>>, vector<1x16x8xf32>,
    %95 = vector.extract_strided_slice %21 {offsets = [0, 0, 32], sizes = [1, 16, 8], strides = [1, 1, 1]} : vector<1x16x64xf32> to vector<1x16x8xf32>
    %96 = vector.extract_strided_slice %23 {offsets = [0, 0, 32], sizes = [1, 16, 8], strides = [1, 1, 1]} : vector<1x16x64xf32> to vector<1x16x8xf32>
    "tpu.trace_start"() <{level = 10 : i32, message = "bqd,bkd->bqk"}> : () -> ()
    %cst_46 = arith.constant dense<0.000000e+00> : vector<1x16x16xf32>
    %97 = tpu.matmul %95, %96, %cst_46 {dimension_numbers = #tpu.dot_dimension_numbers<[2], [2], [1], [1], [0, 0, 0, 1, 1, 1], [0], [0]>} : vector<1x16x8xf32>, vector<1x16x8xf32>, vector<1x16x16xf32> -> vector<1x16x16xf32>
    "tpu.trace_stop"() : () -> ()
    %98 = vector.broadcast %26 : vector<1x1x16xf32> to vector<1x16x16xf32>
    %99 = arith.addf %97, %98 : vector<1x16x16xf32>
    %cst_47 = arith.constant dense<0xFF800000> : vector<1x16xf32>
    %100 = vector.multi_reduction <maximumf>, %99, %cst_47 [2] : vector<1x16x16xf32> to vector<1x16xf32>
    %101 = vector.shape_cast %100 : vector<1x16xf32> to vector<1x16x1xf32>
    %102 = vector.broadcast %101 : vector<1x16x1xf32> to vector<1x16x16xf32>
    %103 = arith.subf %99, %102 : vector<1x16x16xf32>
    %104 = math.exp %103 : vector<1x16x16xf32>
    %cst_48 = arith.constant dense<0.000000e+00> : vector<1x16xf32>
    %105 = vector.multi_reduction <add>, %104, %cst_48 [2] : vector<1x16x16xf32> to vector<1x16xf32>
    %106 = vector.shape_cast %105 : vector<1x16xf32> to vector<1x16x1xf32>
    %107 = vector.broadcast %106 : vector<1x16x1xf32> to vector<1x16x16xf32>
    %108 = arith.divf %104, %107 : vector<1x16x16xf32>
    %109 = vector.extract_strided_slice %25 {offsets = [0, 0, 32], sizes = [1, 16, 8], strides = [1, 1, 1]} : vector<1x16x64xf32> to vector<1x16x8xf32>
    "tpu.trace_start"() <{level = 10 : i32, message = "bqk,bkd->bqd"}> : () -> ()
    %cst_49 = arith.constant dense<0.000000e+00> : vector<1x16x8xf32>
    %110 = tpu.matmul %108, %109, %cst_49 {dimension_numbers = #tpu.dot_dimension_numbers<[2], [1], [1], [2], [0, 0, 0, 1, 1, 2], [0], [0]>} : vector<1x16x16xf32>, vector<1x16x8xf32>, vector<1x16x8xf32> -> vector<1x16x8xf32>
    "tpu.trace_stop"() : () -> ()
    %c0_50 = arith.constant 0 : index
    %c0_51 = arith.constant 0 : index
    %c32 = arith.constant 32 : index
    %111 = vector.load %arg16[%c0_50, %c0_51, %c32] : memref<1x16x64xf32, #tpu.memory_space<vmem>>, vector<1x16x8xf32>
    tpu.vector_store %arg16[%c0_50, %c0_51, %c32], %110 {strides = array<i32>} : memref<1x16x64xf32, #tpu.memory_space<vmem>>, vector<1x16x8xf32>,
    %112 = vector.extract_strided_slice %21 {offsets = [0, 0, 40], sizes = [1, 16, 8], strides = [1, 1, 1]} : vector<1x16x64xf32> to vector<1x16x8xf32>
    %113 = vector.extract_strided_slice %23 {offsets = [0, 0, 40], sizes = [1, 16, 8], strides = [1, 1, 1]} : vector<1x16x64xf32> to vector<1x16x8xf32>
    "tpu.trace_start"() <{level = 10 : i32, message = "bqd,bkd->bqk"}> : () -> ()
    %cst_52 = arith.constant dense<0.000000e+00> : vector<1x16x16xf32>
    %114 = tpu.matmul %112, %113, %cst_52 {dimension_numbers = #tpu.dot_dimension_numbers<[2], [2], [1], [1], [0, 0, 0, 1, 1, 1], [0], [0]>} : vector<1x16x8xf32>, vector<1x16x8xf32>, vector<1x16x16xf32> -> vector<1x16x16xf32>
    "tpu.trace_stop"() : () -> ()
    %115 = vector.broadcast %26 : vector<1x1x16xf32> to vector<1x16x16xf32>
    %116 = arith.addf %114, %115 : vector<1x16x16xf32>
    %cst_53 = arith.constant dense<0xFF800000> : vector<1x16xf32>
    %117 = vector.multi_reduction <maximumf>, %116, %cst_53 [2] : vector<1x16x16xf32> to vector<1x16xf32>
    %118 = vector.shape_cast %117 : vector<1x16xf32> to vector<1x16x1xf32>
    %119 = vector.broadcast %118 : vector<1x16x1xf32> to vector<1x16x16xf32>
    %120 = arith.subf %116, %119 : vector<1x16x16xf32>
    %121 = math.exp %120 : vector<1x16x16xf32>
    %cst_54 = arith.constant dense<0.000000e+00> : vector<1x16xf32>
    %122 = vector.multi_reduction <add>, %121, %cst_54 [2] : vector<1x16x16xf32> to vector<1x16xf32>
    %123 = vector.shape_cast %122 : vector<1x16xf32> to vector<1x16x1xf32>
    %124 = vector.broadcast %123 : vector<1x16x1xf32> to vector<1x16x16xf32>
    %125 = arith.divf %121, %124 : vector<1x16x16xf32>
    %126 = vector.extract_strided_slice %25 {offsets = [0, 0, 40], sizes = [1, 16, 8], strides = [1, 1, 1]} : vector<1x16x64xf32> to vector<1x16x8xf32>
    "tpu.trace_start"() <{level = 10 : i32, message = "bqk,bkd->bqd"}> : () -> ()
    %cst_55 = arith.constant dense<0.000000e+00> : vector<1x16x8xf32>
    %127 = tpu.matmul %125, %126, %cst_55 {dimension_numbers = #tpu.dot_dimension_numbers<[2], [1], [1], [2], [0, 0, 0, 1, 1, 2], [0], [0]>} : vector<1x16x16xf32>, vector<1x16x8xf32>, vector<1x16x8xf32> -> vector<1x16x8xf32>
    "tpu.trace_stop"() : () -> ()
    %c0_56 = arith.constant 0 : index
    %c0_57 = arith.constant 0 : index
    %c40 = arith.constant 40 : index
    %128 = vector.load %arg16[%c0_56, %c0_57, %c40] : memref<1x16x64xf32, #tpu.memory_space<vmem>>, vector<1x16x8xf32>
    tpu.vector_store %arg16[%c0_56, %c0_57, %c40], %127 {strides = array<i32>} : memref<1x16x64xf32, #tpu.memory_space<vmem>>, vector<1x16x8xf32>,
    %129 = vector.extract_strided_slice %21 {offsets = [0, 0, 48], sizes = [1, 16, 8], strides = [1, 1, 1]} : vector<1x16x64xf32> to vector<1x16x8xf32>
    %130 = vector.extract_strided_slice %23 {offsets = [0, 0, 48], sizes = [1, 16, 8], strides = [1, 1, 1]} : vector<1x16x64xf32> to vector<1x16x8xf32>
    "tpu.trace_start"() <{level = 10 : i32, message = "bqd,bkd->bqk"}> : () -> ()
    %cst_58 = arith.constant dense<0.000000e+00> : vector<1x16x16xf32>
    %131 = tpu.matmul %129, %130, %cst_58 {dimension_numbers = #tpu.dot_dimension_numbers<[2], [2], [1], [1], [0, 0, 0, 1, 1, 1], [0], [0]>} : vector<1x16x8xf32>, vector<1x16x8xf32>, vector<1x16x16xf32> -> vector<1x16x16xf32>
    "tpu.trace_stop"() : () -> ()
    %132 = vector.broadcast %26 : vector<1x1x16xf32> to vector<1x16x16xf32>
    %133 = arith.addf %131, %132 : vector<1x16x16xf32>
    %cst_59 = arith.constant dense<0xFF800000> : vector<1x16xf32>
    %134 = vector.multi_reduction <maximumf>, %133, %cst_59 [2] : vector<1x16x16xf32> to vector<1x16xf32>
    %135 = vector.shape_cast %134 : vector<1x16xf32> to vector<1x16x1xf32>
    %136 = vector.broadcast %135 : vector<1x16x1xf32> to vector<1x16x16xf32>
    %137 = arith.subf %133, %136 : vector<1x16x16xf32>
    %138 = math.exp %137 : vector<1x16x16xf32>
    %cst_60 = arith.constant dense<0.000000e+00> : vector<1x16xf32>
    %139 = vector.multi_reduction <add>, %138, %cst_60 [2] : vector<1x16x16xf32> to vector<1x16xf32>
    %140 = vector.shape_cast %139 : vector<1x16xf32> to vector<1x16x1xf32>
    %141 = vector.broadcast %140 : vector<1x16x1xf32> to vector<1x16x16xf32>
    %142 = arith.divf %138, %141 : vector<1x16x16xf32>
    %143 = vector.extract_strided_slice %25 {offsets = [0, 0, 48], sizes = [1, 16, 8], strides = [1, 1, 1]} : vector<1x16x64xf32> to vector<1x16x8xf32>
    "tpu.trace_start"() <{level = 10 : i32, message = "bqk,bkd->bqd"}> : () -> ()
    %cst_61 = arith.constant dense<0.000000e+00> : vector<1x16x8xf32>
    %144 = tpu.matmul %142, %143, %cst_61 {dimension_numbers = #tpu.dot_dimension_numbers<[2], [1], [1], [2], [0, 0, 0, 1, 1, 2], [0], [0]>} : vector<1x16x16xf32>, vector<1x16x8xf32>, vector<1x16x8xf32> -> vector<1x16x8xf32>
    "tpu.trace_stop"() : () -> ()
    %c0_62 = arith.constant 0 : index
    %c0_63 = arith.constant 0 : index
    %c48 = arith.constant 48 : index
    %145 = vector.load %arg16[%c0_62, %c0_63, %c48] : memref<1x16x64xf32, #tpu.memory_space<vmem>>, vector<1x16x8xf32>
    tpu.vector_store %arg16[%c0_62, %c0_63, %c48], %144 {strides = array<i32>} : memref<1x16x64xf32, #tpu.memory_space<vmem>>, vector<1x16x8xf32>,
    %146 = vector.extract_strided_slice %21 {offsets = [0, 0, 56], sizes = [1, 16, 8], strides = [1, 1, 1]} : vector<1x16x64xf32> to vector<1x16x8xf32>
    %147 = vector.extract_strided_slice %23 {offsets = [0, 0, 56], sizes = [1, 16, 8], strides = [1, 1, 1]} : vector<1x16x64xf32> to vector<1x16x8xf32>
    "tpu.trace_start"() <{level = 10 : i32, message = "bqd,bkd->bqk"}> : () -> ()
    %cst_64 = arith.constant dense<0.000000e+00> : vector<1x16x16xf32>
    %148 = tpu.matmul %146, %147, %cst_64 {dimension_numbers = #tpu.dot_dimension_numbers<[2], [2], [1], [1], [0, 0, 0, 1, 1, 1], [0], [0]>} : vector<1x16x8xf32>, vector<1x16x8xf32>, vector<1x16x16xf32> -> vector<1x16x16xf32>
    "tpu.trace_stop"() : () -> ()
    %149 = vector.broadcast %26 : vector<1x1x16xf32> to vector<1x16x16xf32>
    %150 = arith.addf %148, %149 : vector<1x16x16xf32>
    %cst_65 = arith.constant dense<0xFF800000> : vector<1x16xf32>
    %151 = vector.multi_reduction <maximumf>, %150, %cst_65 [2] : vector<1x16x16xf32> to vector<1x16xf32>
    %152 = vector.shape_cast %151 : vector<1x16xf32> to vector<1x16x1xf32>
    %153 = vector.broadcast %152 : vector<1x16x1xf32> to vector<1x16x16xf32>
    %154 = arith.subf %150, %153 : vector<1x16x16xf32>
    %155 = math.exp %154 : vector<1x16x16xf32>
    %cst_66 = arith.constant dense<0.000000e+00> : vector<1x16xf32>
    %156 = vector.multi_reduction <add>, %155, %cst_66 [2] : vector<1x16x16xf32> to vector<1x16xf32>
    %157 = vector.shape_cast %156 : vector<1x16xf32> to vector<1x16x1xf32>
    %158 = vector.broadcast %157 : vector<1x16x1xf32> to vector<1x16x16xf32>
    %159 = arith.divf %155, %158 : vector<1x16x16xf32>
    %160 = vector.extract_strided_slice %25 {offsets = [0, 0, 56], sizes = [1, 16, 8], strides = [1, 1, 1]} : vector<1x16x64xf32> to vector<1x16x8xf32>
    "tpu.trace_start"() <{level = 10 : i32, message = "bqk,bkd->bqd"}> : () -> ()
    %cst_67 = arith.constant dense<0.000000e+00> : vector<1x16x8xf32>
    %161 = tpu.matmul %159, %160, %cst_67 {dimension_numbers = #tpu.dot_dimension_numbers<[2], [1], [1], [2], [0, 0, 0, 1, 1, 2], [0], [0]>} : vector<1x16x16xf32>, vector<1x16x8xf32>, vector<1x16x8xf32> -> vector<1x16x8xf32>
    "tpu.trace_stop"() : () -> ()
    %c0_68 = arith.constant 0 : index
    %c0_69 = arith.constant 0 : index
    %c56 = arith.constant 56 : index
    %162 = vector.load %arg16[%c0_68, %c0_69, %c56] : memref<1x16x64xf32, #tpu.memory_space<vmem>>, vector<1x16x8xf32>
    tpu.vector_store %arg16[%c0_68, %c0_69, %c56], %161 {strides = array<i32>} : memref<1x16x64xf32, #tpu.memory_space<vmem>>, vector<1x16x8xf32>,
    %c0_70 = arith.constant 0 : index
    %c0_71 = arith.constant 0 : index
    %c0_72 = arith.constant 0 : index
    %163 = vector.load %arg16[%c0_70, %c0_71, %c0_72] : memref<1x16x64xf32, #tpu.memory_space<vmem>>, vector<1x16x64xf32>
    %164 = vector.shape_cast %163 : vector<1x16x64xf32> to vector<16x64xf32>
    %c0_73 = arith.constant 0 : index
    %c0_74 = arith.constant 0 : index
    %165 = vector.load %arg11[%c0_73, %c0_74] : memref<64x64xf32, #tpu.memory_space<vmem>>, vector<64x64xf32>
    %cst_75 = arith.constant dense<0.000000e+00> : vector<16x64xf32>
    %166 = tpu.matmul %164, %165, %cst_75 {dimension_numbers = #tpu.dot_dimension_numbers<[1], [0], [0], [1], [0, 0, 1, 1], [], []>} : vector<16x64xf32>, vector<64x64xf32>, vector<16x64xf32> -> vector<16x64xf32>
    %c0_76 = arith.constant 0 : index
    %c0_77 = arith.constant 0 : index
    %167 = vector.load %arg12[%c0_76, %c0_77] : memref<1x64xf32, #tpu.memory_space<vmem>>, vector<1x64xf32>
    %168 = vector.broadcast %167 : vector<1x64xf32> to vector<16x64xf32>
    %169 = arith.addf %166, %168 : vector<16x64xf32>
    %cst_78 = arith.constant dense<0.000000e+00> : vector<16xf32>
    %170 = vector.multi_reduction <add>, %169, %cst_78 [1] : vector<16x64xf32> to vector<16xf32>
    %171 = vector.shape_cast %170 : vector<16xf32> to vector<16x1xf32>
    %cst_79 = arith.constant 6.400000e+01 : f32
    %172 = vector.broadcast %cst_79 : f32 to vector<16x1xf32>
    %173 = arith.divf %171, %172 : vector<16x1xf32>
    %174 = vector.broadcast %173 : vector<16x1xf32> to vector<16x64xf32>
    %175 = arith.subf %169, %174 : vector<16x64xf32>
    %176 = arith.mulf %175, %175 : vector<16x64xf32>
    %cst_80 = arith.constant dense<0.000000e+00> : vector<16xf32>
    %177 = vector.multi_reduction <add>, %176, %cst_80 [1] : vector<16x64xf32> to vector<16xf32>
    %178 = vector.shape_cast %177 : vector<16xf32> to vector<16x1xf32>
    %cst_81 = arith.constant 6.400000e+01 : f32
    %179 = vector.broadcast %cst_81 : f32 to vector<16x1xf32>
    %180 = arith.divf %178, %179 : vector<16x1xf32>
    %cst_82 = arith.constant 9.99999974E-6 : f32
    %181 = vector.broadcast %cst_82 : f32 to vector<16x1xf32>
    %182 = arith.addf %180, %181 : vector<16x1xf32>
    %183 = math.rsqrt %182 : vector<16x1xf32>
    %184 = vector.broadcast %183 : vector<16x1xf32> to vector<16x64xf32>
    %185 = arith.mulf %175, %184 : vector<16x64xf32>
    %c0_83 = arith.constant 0 : index
    %c0_84 = arith.constant 0 : index
    %186 = vector.load %arg13[%c0_83, %c0_84] : memref<1x64xf32, #tpu.memory_space<vmem>>, vector<1x64xf32>
    %187 = vector.broadcast %186 : vector<1x64xf32> to vector<16x64xf32>
    %188 = arith.mulf %185, %187 : vector<16x64xf32>
    %c0_85 = arith.constant 0 : index
    %c0_86 = arith.constant 0 : index
    %189 = vector.load %arg14[%c0_85, %c0_86] : memref<1x64xf32, #tpu.memory_space<vmem>>, vector<1x64xf32>
    %190 = vector.broadcast %189 : vector<1x64xf32> to vector<16x64xf32>
    %191 = arith.addf %188, %190 : vector<16x64xf32>
    %c0_87 = arith.constant 0 : index
    %c0_88 = arith.constant 0 : index
    %c0_89 = arith.constant 0 : index
    %192 = vector.load %arg3[%c0_87, %c0_88, %c0_89] : memref<1x1x16xf32, #tpu.memory_space<vmem>>, vector<1x1x16xf32>
    %193 = vector.shape_cast %192 : vector<1x1x16xf32> to vector<1x16xf32>
    %cst_90 = arith.constant dense<0.000000e+00> : vector<1x64xf32>
    %194 = tpu.matmul %193, %191, %cst_90 {dimension_numbers = #tpu.dot_dimension_numbers<[1], [0], [0], [1], [0, 0, 1, 1], [], []>} : vector<1x16xf32>, vector<16x64xf32>, vector<1x64xf32> -> vector<1x64xf32>
    %cst_91 = arith.constant dense<0.000000e+00> : vector<1xf32>
    %195 = vector.multi_reduction <add>, %193, %cst_91 [1] : vector<1x16xf32> to vector<1xf32>
    %196 = vector.shape_cast %195 : vector<1xf32> to vector<1x1xf32>
    %cst_92 = arith.constant 9.99999993E-9 : f32
    %197 = vector.broadcast %cst_92 : f32 to vector<1x1xf32>
    %198 = arith.addf %196, %197 : vector<1x1xf32>
    %199 = vector.broadcast %198 : vector<1x1xf32> to vector<1x64xf32>
    %200 = arith.divf %194, %199 : vector<1x64xf32>
    %cst_93 = arith.constant 0.000000e+00 : f32
    %201 = vector.broadcast %cst_93 : f32 to vector<1x64xf32>
    %202 = tpu.concatenate %200, %201 in 1 : vector<1x64xf32>, vector<1x64xf32> -> vector<1x128xf32>
    %c0_94 = arith.constant 0 : index
    %c0_95 = arith.constant 0 : index
    %c0_96 = arith.constant 0 : index
    %203 = vector.load %arg15[%c0_94, %c0_95, %c0_96] : memref<1x1x128xf32, #tpu.memory_space<vmem>>, vector<1x1x128xf32>
    %204 = vector.shape_cast %203 : vector<1x1x128xf32> to vector<1x128xf32>
    %205 = vector.shape_cast %202 : vector<1x128xf32> to vector<1x1x128xf32>
    tpu.vector_store %arg15[%c0_94, %c0_95, %c0_96], %205 {strides = array<i32>} : memref<1x1x128xf32, #tpu.memory_space<vmem>>, vector<1x1x128xf32>,
    return
  }
  func.func @transform_0(%arg0: i32) -> (i32, i32) {
    %c0_i32 = arith.constant 0 : i32
    %c0_i32_0 = arith.constant 0 : i32
    return %arg0, %c0_i32 : i32, i32
  }
  func.func @transform_1(%arg0: i32) -> (i32, i32, i32) {
    %c0_i32 = arith.constant 0 : i32
    %c0_i32_0 = arith.constant 0 : i32
    %c0_i32_1 = arith.constant 0 : i32
    return %arg0, %c0_i32, %c0_i32_0 : i32, i32, i32
  }
  func.func @transform_2(%arg0: i32) -> (i32, i32, i32) {
    %c0_i32 = arith.constant 0 : i32
    %c0_i32_0 = arith.constant 0 : i32
    %c0_i32_1 = arith.constant 0 : i32
    return %arg0, %c0_i32, %c0_i32_0 : i32, i32, i32
  }
  func.func @transform_3(%arg0: i32) -> (i32, i32) {
    %c0_i32 = arith.constant 0 : i32
    %c0_i32_0 = arith.constant 0 : i32
    %c0_i32_1 = arith.constant 0 : i32
    return %c0_i32, %c0_i32_0 : i32, i32
  }
  func.func @transform_4(%arg0: i32) -> (i32, i32) {
    %c0_i32 = arith.constant 0 : i32
    %c0_i32_0 = arith.constant 0 : i32
    %c0_i32_1 = arith.constant 0 : i32
    return %c0_i32, %c0_i32_0 : i32, i32
  }
  func.func @transform_5(%arg0: i32) -> (i32, i32) {
    %c0_i32 = arith.constant 0 : i32
    %c0_i32_0 = arith.constant 0 : i32
    %c0_i32_1 = arith.constant 0 : i32
    return %c0_i32, %c0_i32_0 : i32, i32
  }
  func.func @transform_6(%arg0: i32) -> (i32, i32) {
    %c0_i32 = arith.constant 0 : i32
    %c0_i32_0 = arith.constant 0 : i32
    %c0_i32_1 = arith.constant 0 : i32
    return %c0_i32, %c0_i32_0 : i32, i32
  }
  func.func @transform_7(%arg0: i32) -> (i32, i32) {
    %c0_i32 = arith.constant 0 : i32
    %c0_i32_0 = arith.constant 0 : i32
    %c0_i32_1 = arith.constant 0 : i32
    return %c0_i32, %c0_i32_0 : i32, i32
  }
  func.func @transform_8(%arg0: i32) -> (i32, i32) {
    %c0_i32 = arith.constant 0 : i32
    %c0_i32_0 = arith.constant 0 : i32
    %c0_i32_1 = arith.constant 0 : i32
    return %c0_i32, %c0_i32_0 : i32, i32
  }
  func.func @transform_9(%arg0: i32) -> (i32, i32) {
    %c0_i32 = arith.constant 0 : i32
    %c0_i32_0 = arith.constant 0 : i32
    %c0_i32_1 = arith.constant 0 : i32
    return %c0_i32, %c0_i32_0 : i32, i32
  }
  func.func @transform_10(%arg0: i32) -> (i32, i32) {
    %c0_i32 = arith.constant 0 : i32
    %c0_i32_0 = arith.constant 0 : i32
    %c0_i32_1 = arith.constant 0 : i32
    return %c0_i32, %c0_i32_0 : i32, i32
  }
  func.func @transform_11(%arg0: i32) -> (i32, i32) {
    %c0_i32 = arith.constant 0 : i32
    %c0_i32_0 = arith.constant 0 : i32
    %c0_i32_1 = arith.constant 0 : i32
    return %c0_i32, %c0_i32_0 : i32, i32
  }
  func.func @transform_12(%arg0: i32) -> (i32, i32) {
    %c0_i32 = arith.constant 0 : i32
    %c0_i32_0 = arith.constant 0 : i32
    %c0_i32_1 = arith.constant 0 : i32
    return %c0_i32, %c0_i32_0 : i32, i32
  }
  func.func @transform_13(%arg0: i32) -> (i32, i32) {
    %c0_i32 = arith.constant 0 : i32
    %c0_i32_0 = arith.constant 0 : i32
    %c0_i32_1 = arith.constant 0 : i32
    return %c0_i32, %c0_i32_0 : i32, i32
  }
  func.func @transform_14(%arg0: i32) -> (i32, i32, i32) {
    %c0_i32 = arith.constant 0 : i32
    %c0_i32_0 = arith.constant 0 : i32
    %c0_i32_1 = arith.constant 0 : i32
    return %arg0, %c0_i32, %c0_i32_0 : i32, i32, i32
  }
}

</mosaic_0001>

<bundles_post_ra>
// kernel: atomic_level_encoder.1
= control target key start
LH: loop header
LB: loop body
LE: loop exit
PB: predicated region body
PF: predicated region fallthrough
CT: control target
= control target key end

     0   :  { %s4087_s0 = inlined_call_operand.vmem [shape: f32[32,9], index: 0, kind: input, shape index: {}]   ;;  %s4088_s1 = inlined_call_operand.vmem [shape: f32[2,1,16], index: 1, kind: input, shape index: {}]   ;;  %s4089_s2 = inlined_call_operand.vmem [shape: f32[2,1,16], index: 2, kind: input, shape index: {}]   ;;  %s4090_s3 = inlined_call_operand.vmem [shape: f32[9,32], index: 3, kind: input, shape index: {}]   ;;  %s4091_s4 = inlined_call_operand.vmem [shape: f32[1,32], index: 4, kind: input, shape index: {}]   ;;  %s4092_s5 = inlined_call_operand.vmem [shape: f32[32,64], index: 5, kind: input, shape index: {}]   ;;  %s4093_s6 = inlined_call_operand.vmem [shape: f32[1,64], index: 6, kind: input, shape index: {}]   ;;  %s4094_s7 = inlined_call_operand.vmem [shape: f32[16,64], index: 7, kind: input, shape index: {}]   ;;  %s4095_s8 = inlined_call_operand.vmem [shape: f32[64,192], index: 8, kind: input, shape index: {}]   ;;  %s4096_s9 = inlined_call_operand.vmem [shape: f32[1,192], index: 9, kind: input, shape index: {}]   ;;  %s4097_s10 = inlined_call_operand.vmem [shape: f32[64,64], index: 10, kind: input, shape index: {}]   ;;  %s4098_s11 = inlined_call_operand.vmem [shape: f32[1,64], index: 11, kind: input, shape index: {}]   ;;  %s4099_s12 = inlined_call_operand.vmem [shape: f32[1,64], index: 12, kind: input, shape index: {}]   ;;  %s4100_s13 = inlined_call_operand.vmem [shape: f32[1,64], index: 13, kind: input, shape index: {}]   ;;  %s4101_s14 = inlined_call_operand.hbm [shape: f32[2,1,128], index: 14, kind: output, shape index: {}]  }
   0x1   :  { %4103 = sst [smem:[#allocation8_spill]] %s4087_s0 }
   0x2   :  { %4104 = sst [smem:[#allocation9_spill]] %s4090_s3 }
   0x3   :  { %19 = vsyncpa [#allocation4], 0 }
   0x4   :  { %21 = vsyncpa [#allocation4 + $0x1], 0  ;;  %s3604_s29 = smov 0   ;;  %s3606_s30 = smov 0  }
   0x5   :  { %s3608_s15 = smov 0   ;;  %s3610_s16 = smov 0  }
   0x6 LB: > { %4105 = sst [smem:[#allocation6_spill]] %s3503_s15  ;;  %s3625_s17 = sadd.s32 4294967295, %s3507_s16   ;;  %s3507_s16 = sphi %s3610_s16, %s4117_s16   ;;  %s3503_s15 = sphi %s3608_s15, %s4114_s15   ;;  %s3499_s30 = sphi %s3606_s30, %s4116_s30   ;;  %s3495_s29 = sphi %s3604_s29, %s4115_s29  }
   0x7   : > { %s2797_s18 = sadd.s32 4294967294, %s3507_s16   ;;  %s3629_s19 = sadd.s32 1, %s3507_s16  }
   0x8   : > { %s343_s20 = sadd.s32 1, %s3503_s15  ;;  %s340_s21 = ssub.s32 %s3507_s16, %s3629_s19 }
   0x9   : > { %p353_p0 = scmp.ne.s32.totalorder %s3503_s15, %s3499_s30  ;;  %p341_p1 = scmp.eq.s32.totalorder %s340_s21, 0 }
   0xa   : > { %p354_p2 = scmp.eq.s32.totalorder %s3625_s17, 1  ;;  %p359_p3 = scmp.ne.s32.totalorder %s3499_s30, %s3495_s29 }
   0xb   : > { %p360_p4 = scmp.eq.s32.totalorder %s2797_s18, 1  ;;  %p2800_p7 = scmp.ge.s32.totalorder %s3507_s16, 1 }
   0xc   : > { %s3640_s22 = scalar_select %p341_p1, %s3503_s15, %s343_s20  }
   0xd   : > { %p3642_p5 = por %p354_p2, %p353_p0  ;;  %p3646_p6 = por %p360_p4, %p359_p3 }
   0xe   : > { %4106 = sst [smem:[#allocation7_spill]] %s3640_s22  ;;  %p432_p8 = scmp.lt.s32.totalorder %s3507_s16, 3 }
  0x10   : > { %p433_p9 = pnand %p2800_p7, %p432_p8 }
  0x11   : > { %s4109_s3 = sld [smem:[#allocation9_spill]] (!%p433_p9)  ;;  %vm513_vm0 = vcmask (!%p433_p9), 1040384   ;;  %s2801_s18 = sshll.u32 (!%p433_p9), %s3625_s17, 1  ;;  %vm3509_vm1 = vmmov (!%p433_p9), 1   ;;  %v594_v3 = vld [vmem:[%s4092_s5] sm:$0xff] (!%p433_p9)  ;;  %v595_v4 = vld [vmem:[%s4092_s5 + $0x8] sm:$0xff] (!%p433_p9)  ;;  %v709_v52 = vlaneseq (!%p433_p9) }
  0x12   : > { %436 = sbr.rel (%p433_p9) target bundleno = 5694 (0x163e), region = 76  ;;  %vm3114_vm2 = vmpackc.low (!%p433_p9), %vm513_vm0, %vm3509_vm1  ;;  %p484_p10 = scmp.lt.s32.totalorder (!%p433_p9), %s2801_s18, 3  ;;  %v3119_v5 = vpack.c.bf16 (!%p433_p9), %v595_v4, %v594_v3  ;;  %vm506_vm3 = vcmask (!%p433_p9), 72704   ;;  %v596_v8 = vld [vmem:[%s4092_s5 + $0x10] sm:$0xff] (!%p433_p9)  ;;  %v597_v9 = vld [vmem:[%s4092_s5 + $0x18] sm:$0xff] (!%p433_p9)  ;;  %vm605_vm4 = vcmask (!%p433_p9), 261120  }
  0x13   : > { %s4110_s0 = sld [smem:[#allocation8_spill]] (!%p433_p9)  ;;  %v3123_v10 = vpack.c.bf16 (!%p433_p9), %v597_v9, %v596_v8  ;;  %v692_v11 = vld [vmem:[%s4095_s8 + $0x8] sm:$0xff] (!%p433_p9)  ;;  %v694_v12 = vld [vmem:[%s4095_s8 + $0x18] sm:$0xff] (!%p433_p9)  ;;  %v691_v13 = vld [vmem:[%s4095_s8] sm:$0xff] (!%p433_p9)  ;;  %v3510_v42 = vmov (!%p433_p9), 0.0   ;;  %vm719_vm5 = vcmask (!%p433_p9), 523264  }
  0x14   : > { %3120 = vmatprep.subr.bf16.mxu1 (!%p433_p9), %v3119_v5  ;;  %v3127_v14 = vpack.c.bf16 (!%p433_p9), %v694_v12, %v692_v11  ;;  %v693_v15 = vld [vmem:[%s4095_s8 + $0x10] sm:$0xff] (!%p433_p9)  ;;  %v696_v16 = vld [vmem:[%s4095_s8 + $0x28] sm:$0xff] (!%p433_p9)  ;;  %v698_v17 = vld [vmem:[%s4095_s8 + $0x38] sm:$0xff] (!%p433_p9)  ;;  %v710_v53 = vshrl.u32 (!%p433_p9), %v709_v52, 7  ;;  %vm816_vm6 = vcmask (!%p433_p9), 64512   ;;  %p489_p11 = scmp.lt.s32.totalorder (!%p433_p9), %s3625_s17, 1 }
  0x15   : > { %3122 = vmatpush3.bf16.msra.mxu1 (!%p433_p9), %v3119_v5  ;;  %v3129_v18 = vpack.c.bf16 (!%p433_p9), %v693_v15, %v691_v13  ;;  %v3131_v19 = vpack.c.bf16 (!%p433_p9), %v698_v17, %v696_v16  ;;  %v695_v20 = vld [vmem:[%s4095_s8 + $0x20] sm:$0xff] (!%p433_p9)  ;;  %v697_v21 = vld [vmem:[%s4095_s8 + $0x30] sm:$0xff] (!%p433_p9)  ;;  %v700_v22 = vld [vmem:[%s4095_s8 + $0x48] sm:$0xff] (!%p433_p9)  ;;  %vm900_vm8 = vcmask (!%p433_p9), 130048   ;;  %s3512_s26 = smov (!%p433_p9), 56   ;;  %s3513_s27 = smov (!%p433_p9), 120  }
  0x16   : > { %3124 = vmatprep.subr.bf16.mxu1 (!%p433_p9), %v3123_v10  ;;  %v702_v23 = vld [vmem:[%s4095_s8 + $0x58] sm:$0xff] (!%p433_p9)  ;;  %v3133_v24 = vpack.c.bf16 (!%p433_p9), %v697_v21, %v695_v20  ;;  %v699_v26 = vld [vmem:[%s4095_s8 + $0x40] sm:$0xff] (!%p433_p9)  ;;  %v701_v27 = vld [vmem:[%s4095_s8 + $0x50] sm:$0xff] (!%p433_p9)  ;;  %v711_v54 = vsub.s32 (!%p433_p9), 0, %v710_v53  ;;  %v715_v57 = vsub.s32 (!%p433_p9), 1, %v710_v53  ;;  %s3515_s20 = smov (!%p433_p9), 112  }
  0x17   : > { %v497_v0 = vld [vmem:[%s4109_s3] sm:$0xff] (!%p433_p9)  ;;  %v498_v1 = vld [vmem:[%s4109_s3 + $0x8] sm:$0x1] (!%p433_p9)  ;;  %v3135_v25 = vpack.c.bf16 (!%p433_p9), %v702_v23, %v700_v22  ;;  %v3137_v28 = vpack.c.bf16 (!%p433_p9), %v701_v27, %v699_v26  ;;  %v706_v37 = vld [vmem:[%s4095_s8 + $0x78] sm:$0xff] (!%p433_p9)  ;;  %s3516_s21 = smov (!%p433_p9), 40   ;;  %s3517_s15 = smov (!%p433_p9), 104  }
  0x18   : > { %v3113_v2 = vpack.c.bf16 (!%p433_p9), %v498_v1, %v497_v0  ;;  %v2803_v29 = vld [vmem:[%s4091_s4] ss:$0 sm:$0xff] (!%p433_p9)  ;;  %v704_v36 = vld [vmem:[%s4095_s8 + $0x68] sm:$0xff] (!%p433_p9)  ;;  %v705_v40 = vld [vmem:[%s4095_s8 + $0x70] sm:$0xff] (!%p433_p9)  ;;  %s3519_s3 = smov (!%p433_p9), 32   ;;  %vm1216_vm9 = vcmask (!%p433_p9), 130112  }
  0x19   : > { %s4119_s18 = smov (!%p484_p10, %s2801_s18), 3  ;;  %3126 = vmatpush3.bf16.msra.mxu1 %v3123_v10  ;;  %v3139_v38 = vpack.c.bf16 %v706_v37, %v704_v36  ;;  %v703_v39 = vld [vmem:[%s4095_s8 + $0x60] sm:$0xff]  ;;  %v688_v50 = vld [vmem:[%s4094_s7 + $0x8] sm:$0xff]  ;;  %vm3756_vm7 = vmpackc.low %vm816_vm6, %vm816_vm6  ;;  %vm1427_vm10 = vcmask 195712   ;;  %vm1638_vm11 = vcmask 261312   ;;  %vm1849_vm12 = vcmask 326912  }
  0x1a   : > { %3115 = vmatprep.subr.msk.bf16.mxu0 %vm3114_vm2, %v3113_v2  ;;  %s2802_s25 = sshll.u32 %s4119_s18, 3  ;;  %v3141_v41 = vpack.c.bf16 %v705_v40, %v703_v39  ;;  %v2807_v43 = vld [vmem:[%s4093_s6] ss:$0 sm:$0xff]  ;;  %s3520_s18 = smov 88   ;;  %vm2060_vm13 = vcmask 392512   ;;  %vm2271_vm14 = vcmask 458112  }
  0x1b   : > { %3118 = vmatpush3.bf16.msk.msra.mxu0 %vm3114_vm2, %v3113_v2  ;;  %s487_s28 = scalar_lea.vmem %s4110_s0, %s2802_s25  ;;  %v687_v46 = vld [vmem:[%s4094_s7] sm:$0xff]  ;;  %s3511_s0 = smov 64   ;;  %vm2482_vm15 = vcmask 523712   ;;  %vm3527_vm0 = vmmov 0   ;;  %vm2702_vm1 = vcmask 122880  }
  0x1c   : > { %v495_v6 = vld [vmem:[%s487_s28] sm:$0xff]  ;;  %v496_v7 = vld [vmem:[%s487_s28 + $0x8] sm:$0xff]  ;;  %3128 = vmatprep.subr.bf16.mxu0 %v3127_v14  ;;  %s3768_s22 = scalar_select %p489_p11, %s3625_s17, 1 }
  0x1d   : > { %2961 = vmatprep.mubr.msk.f32.mxu0 %vm506_vm3, %v495_v6  ;;  %v707_v55 = vld [vmem:[%s4096_s9] sm:$0x3]  ;;  %s3514_s28 = smov 48  }
  0x1e   : > { %2962 = vmatmul.mubr.msk.f32.vlgmr.msra.gmra.mrb[0].mxu0 %vm506_vm3, %v496_v7  ;;  %v712_v56 = vrot.slane %v707_v55, %v711_v54  ;;  %v716_v61 = vrot.slane %v707_v55, %v715_v57  ;;  %s491_s25 = scalar_lea.vmem %s4088_s1, %s3768_s22 }
  0x1f   : > { %3130 = vmatpush1.bf16.msra.mxu0 %v3129_v18  ;;  %790 = vmatprep.mubr.f32.mxu0 %v3510_v42  ;;  %v3774_v11 = vld [vmem:[%s491_s25] ss:$0 sm:$0xff]  ;;  %s3521_s25 = smov 24  }
  0x20   : > { %3132 = vmatprep.subr.bf16.mxu0 %v3131_v19 }
  0x23   : > { %3134 = vmatpush1.bf16.msra.mxu0 %v3133_v24 }
  0x24   : > { %3136 = vmatprep.subr.bf16.mxu0 %v3135_v25 }
  0x27   : > { %3138 = vmatpush1.bf16.msra.mxu0 %v3137_v28 }
  0x28   : > { %3140 = vmatprep.subr.bf16.mxu0 %v3139_v38 }
  0x2b   : > { %3142 = vmatpush1.bf16.msra.mxu0 %v3141_v41 }
  0xf1   : > { %v2963_v30 = vpop.f32.mrb[0].mxu0 }
  0xf2   : > { %v589_v31 = vadd.f32 %v2963_v30, %v2803_v29  ;;  %v583_v32 = vpop.f32.mrb[1].mxu0 }
  0xf3   : > { %v584_v33 = vadd.f32 %v2803_v29, %v583_v32 }
  0xf4   : > { %v593_v35 = vmax.f32 %v589_v31, 0.0 }
  0xf5   : > { %v592_v34 = vmax.f32 %v584_v33, 0.0 }
  0xf7   : > { %2972 = vmatprep.mubr.msk.f32.mxu1 %vm605_vm4, %v592_v34 }
  0xf8   : > { %2973 = vmatmul.mubr.msk.f32.vlgmr.msra.gmra.mrb[0].mxu1 %vm605_vm4, %v593_v35 }
 0x1cb   : > { %v2974_v44 = vpop.f32.mrb[0].mxu1 }
 0x1cc   : > { %v678_v45 = vpop.f32.mrb[1].mxu1  ;;  %v684_v48 = vadd.f32 %v2974_v44, %v2807_v43 }
 0x1cd   : > { %v679_v47 = vadd.f32 %v2807_v43, %v678_v45 }
 0x1ce   : > { %v690_v51 = vadd.f32 %v688_v50, %v684_v48 }
 0x1cf   : > { %v689_v49 = vadd.f32 %v687_v46, %v679_v47 }
 0x1d1   : > { %2810 = vmatmul.mubr.msk.f32.vlgmr.msra.gmra.mrb[2].mxu0 %vm719_vm5, %v689_v49 }
 0x1d2   : > { %796 = vmatprep.mubr.f32.mxu0 %v3510_v42 }
 0x1d5   : > { %2811 = vmatmul.mubr.msk.f32.gmra.mrb[4].mxu0 %vm719_vm5, %v690_v51 }
 0x2a4   : > { %v792_v58 = vpop.f32.mrb[2].mxu0 }
 0x2a5   : > { %v3741_v59 = vadd.f32 %v792_v58, %v712_v56  ;;  %v794_v60 = vpop.f32.mrb[3].mxu0 }
 0x2a6   : > { %v795_v1 = vadd.f32 %v794_v60, %v716_v61 }
 0x2a7   : > { %2979 = vmatprep.mubr.msk.f32.mxu1 %vm816_vm6, %v3741_v59 }
 0x2a8   : > { %v798_v62 = vpop.f32.mrb[4].mxu0 }
 0x2a9   : > { %v3745_v63 = vadd.f32 %v798_v62, %v712_v56  ;;  %v800_v0 = vpop.f32.mrb[5].mxu0 }
 0x2aa   : > { %v801_v2 = vadd.f32 %v800_v0, %v716_v61 }
 0x2ab   : > { %v3749_v3 = vpack.i.bf16 %v3745_v63, %v3741_v59 }
 0x2ac   : > { %v3149_v4 = vpack.c.bf16 %v801_v2, %v795_v1  ;;  %v3751_v5 = vpack.i.bf16 %v801_v2, %v795_v1 }
 0x2ad   : > { %3301 = vrot.lane.b32.xlu0 %v3749_v3, %s3511_s0  ;;  %s3518_s0 = smov 96  }
 0x31f   : > { %v3302_v6 = vpop.permute.xlu0 %3301 }
 0x320   : > { %v3304_v7 = vunpack.i.h.bf16 %v3302_v6  ;;  %v3303_v8 = vunpack.i.l.bf16 %v3302_v6 }
 0x322   : > { %v3143_v10 = vpack.c.bf16 %v3304_v7, %v3303_v8 }
 0x324   : > { %3145 = vmatprep.subr.msk.bf16.mxu1 %vm3756_vm7, %v3143_v10 }
 0x325   : > { %3148 = vmatpush3.bf16.xpose.msk.msra.mxu1 %vm3756_vm7, %v3143_v10 }
 0x326   : > { %3150 = vmatprep.subr.bf16.mxu1 %v3149_v4 }
 0x32c   : > { %2980 = vmatmul.mubr.msk.f32.vlgmr.msra.gmra.mrb[2].mxu1 %vm816_vm6, %v3745_v63 }
 0x32d   : > { %3152 = vmatpush3.bf16.msra.mxu1 %v3149_v4 }
 0x3ff   : > { %v2981_v12 = vpop.f32.mrb[2].mxu1 }
 0x400   : > { %v897_v13 = vadd.f32 %v2981_v12, %v3774_v11  ;;  %v891_v14 = vpop.f32.mrb[3].mxu1 }
 0x401   : > { %v892_v15 = vadd.f32 %v3774_v11, %v891_v14 }
 0x402   : > { %v904_v16 = vsel %vm900_vm8, %v897_v13, -inf }
 0x403   : > { %905 = vmax.xlane.f32.xlu1 %v904_v16  ;;  %v901_v17 = vsel %vm900_vm8, %v892_v15, -inf }
 0x404   : > { %902 = vmax.xlane.f32.xlu0 %v901_v17 }
 0x414   : > { %3306 = vrot.lane.b32.xlu1 %v3749_v3, %s3512_s26 }
 0x418   : > { %1006 = vrot.lane.b32.xlu1 %v3741_v59, %s3513_s27 }
 0x41a   : > { %1008 = vrot.lane.b32.xlu0 %v3745_v63, %s3513_s27 }
 0x41c   : > { %3311 = vrot.lane.b32.xlu1 %v3749_v3, %s3514_s28 }
 0x420   : > { %1219 = vrot.lane.b32.xlu1 %v3741_v59, %s3515_s20 }
 0x490   : > { %v906_v18 = vpop.xlane.xlu1 %905 }
 0x491   : > { %v908_v19 = vsub.f32 %v897_v13, %v906_v18  ;;  %v903_v20 = vpop.xlane.xlu0 %902 }
 0x492   : > { %v907_v21 = vsub.f32 %v892_v15, %v903_v20 }
 0x493   : > { %v911_v22 = vmul.f32 1.442695, %v908_v19 }
 0x494   : > { %v909_v23 = vmul.f32 1.442695, %v907_v21  ;;  %v3307_v24 = vpop.permute.xlu1 %3306 }
 0x495   : > { %3375 = vpow2.f32 %v911_v22  ;;  %v3309_v25 = vunpack.i.h.bf16 %v3307_v24  ;;  %v3308_v26 = vunpack.i.l.bf16 %v3307_v24  ;;  %v1009_v34 = vpop.permute.xlu0 %1008 }
 0x496   : > { %3377 = vpow2.f32 %v909_v23 }
 0x497   : > { %v3153_v27 = vpack.c.bf16 %v3309_v25, %v3308_v26 }
 0x498   : > { %v1007_v28 = vpop.permute.xlu1 %1006 }
 0x499   : > { %3155 = vmatprep.subr.msk.bf16.mxu0 %vm3756_vm7, %v3153_v27  ;;  %2993 = vmatprep.mubr.msk.f32.mxu0 %vm816_vm6, %v1007_v28 }
 0x49a   : > { %3158 = vmatpush3.bf16.xpose.msk.msra.mxu0 %vm3756_vm7, %v3153_v27 }
 0x49c   : > { %v3312_v29 = vpop.permute.xlu1 %3311 }
 0x49d   : > { %v3314_v30 = vunpack.i.h.bf16 %v3312_v29  ;;  %v3313_v31 = vunpack.i.l.bf16 %v3312_v29 }
 0x49f   : > { %v3376_v32 = vpop.eup %3375  ;;  %v3163_v33 = vpack.c.bf16 %v3314_v30, %v3313_v31 }
 0x4a0   : > { %v916_v35 = vsel %vm900_vm8, %v3376_v32, 0.0  ;;  %v3378_v36 = vpop.eup %3377  ;;  %v1220_v38 = vpop.permute.xlu1 %1219 }
 0x4a1   : > { %917 = vadd.xlane.f32.xlu1 %v916_v35  ;;  %2994 = vmatmul.mubr.msk.f32.vlgmr.msra.gmra.mrb[6].mxu0 %vm816_vm6, %v1009_v34  ;;  %v913_v37 = vsel %vm900_vm8, %v3378_v36, 0.0 }
 0x4a2   : > { %3165 = vmatprep.subr.msk.bf16.mxu1 %vm3756_vm7, %v3163_v33 }
 0x4a5   : > { %914 = vadd.xlane.f32.xlu1 %v913_v37 }
 0x4b6   : > { %1221 = vrot.lane.b32.xlu1 %v3745_v63, %s3515_s20 }
 0x52e   : > { %v918_v39 = vpop.xlane.xlu1 %917 }
 0x52f   : > { %3379 = vrcp.f32 %v918_v39 }
 0x532   : > { %v915_v40 = vpop.xlane.xlu1 %914 }
 0x533   : > { %3381 = vrcp.f32 %v915_v40 }
 0x536   : > { %v1222_v46 = vpop.permute.xlu1 %1221 }
 0x539   : > { %v3380_v41 = vpop.eup %3379 }
 0x53a   : > { %v922_v45 = vmul.f32 %v3380_v41, %v3376_v32 }
 0x53d   : > { %v3382_v43 = vpop.eup %3381 }
 0x53e   : > { %v920_v44 = vmul.f32 %v3382_v43, %v3378_v36 }
 0x540   : > { %2986 = vmatprep.mubr.msk.f32.mxu1 %vm900_vm8, %v920_v44 }
 0x541   : > { %2987 = vmatmul.mubr.msk.f32.vlgmr.msra.gmra.mrb[4].mxu1 %vm900_vm8, %v922_v45 }
 0x542   : > { %3168 = vmatpush3.bf16.xpose.msk.msra.mxu1 %vm3756_vm7, %v3163_v33  ;;  %3007 = vmatprep.mubr.msk.f32.mxu1 %vm816_vm6, %v1220_v38 }
 0x549   : > { %3008 = vmatmul.mubr.msk.f32.vlgmr.msra.gmra.mrb[6].mxu1 %vm816_vm6, %v1222_v46 }
 0x574   : > { %v2995_v47 = vpop.f32.mrb[6].mxu0 }
 0x575   : > { %v1094_v48 = vadd.f32 %v2995_v47, %v3774_v11  ;;  %v1088_v49 = vpop.f32.mrb[7].mxu0 }
 0x576   : > { %v1089_v50 = vadd.f32 %v3774_v11, %v1088_v49 }
 0x577   : > { %v1100_v51 = vsel %vm900_vm8, %v1094_v48, -inf }
 0x578   : > { %1101 = vmax.xlane.f32.xlu0 %v1100_v51  ;;  %v1097_v52 = vsel %vm900_vm8, %v1089_v50, -inf }
 0x579   : > { %1098 = vmax.xlane.f32.xlu1 %v1097_v52 }
 0x605   : > { %v1102_v56 = vpop.xlane.xlu0 %1101 }
 0x606   : > { %v1099_v53 = vpop.xlane.xlu1 %1098  ;;  %v1104_v57 = vsub.f32 %v1094_v48, %v1102_v56 }
 0x607   : > { %v1103_v54 = vsub.f32 %v1089_v50, %v1099_v53 }
 0x608   : > { %v1107_v0 = vmul.f32 1.442695, %v1104_v57 }
 0x609   : > { %v1105_v55 = vmul.f32 1.442695, %v1103_v54 }
 0x60b   : > { %3383 = vpow2.f32 %v1105_v55 }
 0x60c   : > { %3385 = vpow2.f32 %v1107_v0 }
 0x614   : > { %v2988_v58 = vpop.f32.mrb[4].mxu1 }
 0x615   : > { %v3384_v60 = vpop.eup %3383  ;;  %1005 = vst.msk [vmem:[#allocation2 + $0x8] sm:$0xff] %vm816_vm6, %v2988_v58  ;;  %v995_v61 = vpop.f32.mrb[5].mxu1 }
 0x616   : > { %1004 = vst.msk [vmem:[#allocation2] sm:$0xff] %vm816_vm6, %v995_v61  ;;  %v1109_v62 = vsel %vm900_vm8, %v3384_v60, 0.0  ;;  %v3386_v10 = vpop.eup %3385 }
 0x617   : > { %1110 = vadd.xlane.f32.xlu0 %v1109_v62  ;;  %v1112_v12 = vsel %vm900_vm8, %v3386_v10, 0.0 }
 0x61c   : > { %v3009_v1 = vpop.f32.mrb[6].mxu1 }
 0x61d   : > { %v1301_v2 = vpop.f32.mrb[7].mxu1  ;;  %v1307_v6 = vadd.f32 %v3009_v1, %v3774_v11 }
 0x61e   : > { %v1302_v4 = vadd.f32 %v3774_v11, %v1301_v2 }
 0x61f   : > { %v1313_v8 = vsel %vm900_vm8, %v1307_v6, -inf }
 0x620   : > { %v1310_v7 = vsel %vm900_vm8, %v1302_v4, -inf }
 0x621   : > { %1311 = vmax.xlane.f32.xlu1 %v1310_v7 }
 0x625   : > { %1314 = vmax.xlane.f32.xlu1 %v1313_v8 }
 0x629   : > { %1113 = vadd.xlane.f32.xlu1 %v1112_v12 }
 0x6a4   : > { %v1111_v13 = vpop.xlane.xlu0 %1110 }
 0x6a5   : > { %3387 = vrcp.f32 %v1111_v13 }
 0x6ae   : > { %v1312_v14 = vpop.xlane.xlu1 %1311 }
 0x6af   : > { %v3388_v15 = vpop.eup %3387  ;;  %v1316_v16 = vsub.f32 %v1302_v4, %v1312_v14 }
 0x6b0   : > { %v1116_v17 = vmul.f32 %v3388_v15, %v3384_v60 }
 0x6b1   : > { %v1318_v18 = vmul.f32 1.442695, %v1316_v16 }
 0x6b2   : > { %v1315_v19 = vpop.xlane.xlu1 %1314  ;;  %3000 = vmatprep.mubr.msk.f32.mxu0 %vm900_vm8, %v1116_v17 }
 0x6b3   : > { %3389 = vpow2.f32 %v1318_v18  ;;  %v1317_v20 = vsub.f32 %v1307_v6, %v1315_v19 }
 0x6b5   : > { %v1320_v21 = vmul.f32 1.442695, %v1317_v20 }
 0x6b6   : > { %v1114_v26 = vpop.xlane.xlu1 %1113 }
 0x6b7   : > { %3391 = vpow2.f32 %v1320_v21 }
 0x6b8   : > { %3393 = vrcp.f32 %v1114_v26 }
 0x6bd   : > { %v3390_v22 = vpop.eup %3389 }
 0x6be   : > { %v1322_v23 = vsel %vm900_vm8, %v3390_v22, 0.0 }
 0x6bf   : > { %1323 = vadd.xlane.f32.xlu0 %v1322_v23 }
 0x6c1   : > { %v3392_v24 = vpop.eup %3391 }
 0x6c2   : > { %v1325_v25 = vsel %vm900_vm8, %v3392_v24, 0.0  ;;  %v3394_v33 = vpop.eup %3393 }
 0x6c3   : > { %1326 = vadd.xlane.f32.xlu1 %v1325_v25  ;;  %v1118_v38 = vmul.f32 %v3394_v33, %v3386_v10 }
 0x6d4   : > { %3321 = vrot.lane.b32.xlu1 %v3751_v5, %s3515_s20  ;;  %s3523_s20 = smov 16  }
 0x6d5   : > { %3316 = vrot.lane.b32.xlu0 %v3751_v5, %s3513_s27  ;;  %s3522_s27 = smov 80  }
 0x6d8   : > { %3326 = vrot.lane.b32.xlu1 %v3749_v3, %s3516_s21 }
 0x6d9   : > { %1430 = vrot.lane.b32.xlu0 %v3741_v59, %s3517_s15 }
 0x6dc   : > { %1432 = vrot.lane.b32.xlu1 %v3745_v63, %s3517_s15 }
 0x74c   : > { %v1324_v27 = vpop.xlane.xlu0 %1323 }
 0x74d   : > { %3395 = vrcp.f32 %v1324_v27 }
 0x750   : > { %v3317_v28 = vpop.permute.xlu0 %3316  ;;  %v1327_v29 = vpop.xlane.xlu1 %1326 }
 0x751   : > { %v3319_v30 = vunpack.i.h.bf16 %v3317_v28  ;;  %v3318_v31 = vunpack.i.l.bf16 %v3317_v28  ;;  %3397 = vrcp.f32 %v1327_v29 }
 0x753   : > { %v3159_v32 = vpack.c.bf16 %v3319_v30, %v3318_v31 }
 0x754   : > { %v3322_v34 = vpop.permute.xlu1 %3321  ;;  %v1431_v48 = vpop.permute.xlu0 %1430 }
 0x755   : > { %v3324_v35 = vunpack.i.h.bf16 %v3322_v34  ;;  %v3323_v36 = vunpack.i.l.bf16 %v3322_v34  ;;  %3160 = vmatprep.subr.bf16.mxu0 %v3159_v32 }
 0x756   : > { %3162 = vmatpush3.bf16.msra.mxu0 %v3159_v32 }
 0x757   : > { %v3396_v37 = vpop.eup %3395  ;;  %v3169_v39 = vpack.c.bf16 %v3324_v35, %v3323_v36 }
 0x758   : > { %v3327_v40 = vpop.permute.xlu1 %3326  ;;  %v1329_v41 = vmul.f32 %v3396_v37, %v3390_v22 }
 0x759   : > { %v3329_v43 = vunpack.i.h.bf16 %v3327_v40  ;;  %v3328_v44 = vunpack.i.l.bf16 %v3327_v40  ;;  %3001 = vmatmul.mubr.msk.f32.vlgmr.msra.gmra.mrb[8].mxu0 %vm900_vm8, %v1118_v38  ;;  %3170 = vmatprep.subr.bf16.mxu0 %v3169_v39 }
 0x75a   : > { %3172 = vmatpush3.bf16.msra.mxu0 %v3169_v39  ;;  %3014 = vmatprep.mubr.msk.f32.mxu0 %vm900_vm8, %v1329_v41 }
 0x75b   : > { %v3398_v45 = vpop.eup %3397  ;;  %v3173_v46 = vpack.c.bf16 %v3329_v43, %v3328_v44 }
 0x75c   : > { %v1331_v47 = vmul.f32 %v3398_v45, %v3392_v24  ;;  %v1433_v49 = vpop.permute.xlu1 %1432 }
 0x75d   : > { %3175 = vmatprep.subr.msk.bf16.mxu0 %vm3756_vm7, %v3173_v46 }
 0x75e   : > { %3015 = vmatmul.mubr.msk.f32.vlgmr.msra.gmra.mrb[10].mxu0 %vm900_vm8, %v1331_v47 }
 0x75f   : > { %3021 = vmatprep.mubr.msk.f32.mxu0 %vm816_vm6, %v1431_v48 }
 0x763   : > { %3178 = vmatpush3.bf16.xpose.msk.msra.mxu0 %vm3756_vm7, %v3173_v46 }
 0x76a   : > { %3022 = vmatmul.mubr.msk.f32.vlgmr.msra.gmra.mrb[12].mxu0 %vm816_vm6, %v1433_v49 }
 0x82c   : > { %v3842_v50 = vpop.f32.mrb[8].mxu0 }
 0x82d   : > { %v3844_v51 = vpop.f32.mrb[9].mxu0 }
 0x831   : > { %v3846_v52 = vpop.f32.mrb[10].mxu0 }
 0x832   : > { %v3848_v53 = vpop.f32.mrb[11].mxu0 }
 0x83d   : > { %v3023_v54 = vpop.f32.mrb[12].mxu0 }
 0x83e   : > { %v1518_v55 = vadd.f32 %v3023_v54, %v3774_v11  ;;  %v1512_v56 = vpop.f32.mrb[13].mxu0 }
 0x83f   : > { %v1513_v57 = vadd.f32 %v3774_v11, %v1512_v56 }
 0x840   : > { %v1524_v58 = vsel %vm900_vm8, %v1518_v55, -inf }
 0x841   : > { %1525 = vmax.xlane.f32.xlu1 %v1524_v58  ;;  %v1521_v60 = vsel %vm900_vm8, %v1513_v57, -inf }
 0x842   : > { %1522 = vmax.xlane.f32.xlu0 %v1521_v60 }
 0x852   : > { %3331 = vrot.lane.b32.xlu1 %v3751_v5, %s3517_s15  ;;  %s3524_s15 = smov 72  }
 0x856   : > { %1641 = vrot.lane.b32.xlu1 %v3741_v59, %s3518_s0 }
 0x85a   : > { %1643 = vrot.lane.b32.xlu1 %v3745_v63, %s3518_s0 }
 0x8ce   : > { %v1526_v61 = vpop.xlane.xlu1 %1525 }
 0x8cf   : > { %v1528_v62 = vsub.f32 %v1518_v55, %v1526_v61  ;;  %v1523_v0 = vpop.xlane.xlu0 %1522 }
 0x8d0   : > { %v1527_v1 = vsub.f32 %v1513_v57, %v1523_v0 }
 0x8d1   : > { %v1531_v2 = vmul.f32 1.442695, %v1528_v62 }
 0x8d2   : > { %v1529_v4 = vmul.f32 1.442695, %v1527_v1  ;;  %v3332_v6 = vpop.permute.xlu1 %3331 }
 0x8d3   : > { %3399 = vpow2.f32 %v1531_v2  ;;  %v3334_v7 = vunpack.i.h.bf16 %v3332_v6  ;;  %v3333_v8 = vunpack.i.l.bf16 %v3332_v6 }
 0x8d4   : > { %3401 = vpow2.f32 %v1529_v4 }
 0x8d5   : > { %v3179_v10 = vpack.c.bf16 %v3334_v7, %v3333_v8 }
 0x8d6   : > { %v1642_v26 = vpop.permute.xlu1 %1641 }
 0x8d7   : > { %3180 = vmatprep.subr.bf16.mxu1 %v3179_v10 }
 0x8d8   : > { %3182 = vmatpush3.bf16.msra.mxu1 %v3179_v10 }
 0x8da   : > { %v1644_v27 = vpop.permute.xlu1 %1643 }
 0x8dd   : > { %v3400_v12 = vpop.eup %3399 }
 0x8de   : > { %v1536_v13 = vsel %vm900_vm8, %v3400_v12, 0.0  ;;  %v3402_v14 = vpop.eup %3401 }
 0x8df   : > { %1537 = vadd.xlane.f32.xlu0 %v1536_v13  ;;  %v1533_v15 = vsel %vm900_vm8, %v3402_v14, 0.0 }
 0x8e3   : > { %1534 = vadd.xlane.f32.xlu0 %v1533_v15 }
 0x8f9   : > { %3336 = vrot.lane.b32.xlu0 %v3749_v3, %s3519_s3 }
 0x96c   : > { %v1538_v16 = vpop.xlane.xlu0 %1537 }
 0x96d   : > { %3403 = vrcp.f32 %v1538_v16 }
 0x970   : > { %v1535_v17 = vpop.xlane.xlu0 %1534 }
 0x971   : > { %3405 = vrcp.f32 %v1535_v17 }
 0x974   : > { %v3337_v18 = vpop.permute.xlu0 %3336 }
 0x975   : > { %v3339_v19 = vunpack.i.h.bf16 %v3337_v18  ;;  %v3338_v20 = vunpack.i.l.bf16 %v3337_v18 }
 0x977   : > { %v3183_v21 = vpack.c.bf16 %v3339_v19, %v3338_v20  ;;  %v3404_v22 = vpop.eup %3403 }
 0x978   : > { %v1542_v25 = vmul.f32 %v3404_v22, %v3400_v12 }
 0x979   : > { %3185 = vmatprep.subr.msk.bf16.mxu1 %vm3756_vm7, %v3183_v21 }
 0x97b   : > { %v3406_v23 = vpop.eup %3405 }
 0x97c   : > { %v1540_v24 = vmul.f32 %v3406_v23, %v3402_v14 }
 0x97e   : > { %3028 = vmatprep.mubr.msk.f32.mxu1 %vm900_vm8, %v1540_v24 }
 0x97f   : > { %3029 = vmatmul.mubr.msk.f32.vlgmr.msra.gmra.mrb[8].mxu1 %vm900_vm8, %v1542_v25 }
 0x980   : > { %3188 = vmatpush3.bf16.xpose.msk.msra.mxu1 %vm3756_vm7, %v3183_v21  ;;  %3035 = vmatprep.mubr.msk.f32.mxu1 %vm816_vm6, %v1642_v26 }
 0x987   : > { %3036 = vmatmul.mubr.msk.f32.vlgmr.msra.gmra.mrb[10].mxu1 %vm816_vm6, %v1644_v27 }
 0xa52   : > { %v3872_v28 = vpop.f32.mrb[8].mxu1 }
 0xa53   : > { %v3874_v29 = vpop.f32.mrb[9].mxu1 }
 0xa5a   : > { %v3037_v30 = vpop.f32.mrb[10].mxu1 }
 0xa5b   : > { %v1729_v31 = vadd.f32 %v3037_v30, %v3774_v11  ;;  %v1723_v32 = vpop.f32.mrb[11].mxu1 }
 0xa5c   : > { %v1724_v33 = vadd.f32 %v3774_v11, %v1723_v32 }
 0xa5d   : > { %v1735_v34 = vsel %vm900_vm8, %v1729_v31, -inf }
 0xa5e   : > { %1736 = vmax.xlane.f32.xlu1 %v1735_v34  ;;  %v1732_v35 = vsel %vm900_vm8, %v1724_v33, -inf }
 0xa5f   : > { %1733 = vmax.xlane.f32.xlu0 %v1732_v35 }
 0xa6f   : > { %3341 = vrot.lane.b32.xlu1 %v3751_v5, %s3518_s0  ;;  %s3525_s0 = smov 8  }
 0xa73   : > { %1852 = vrot.lane.b32.xlu1 %v3741_v59, %s3520_s18 }
 0xa77   : > { %1854 = vrot.lane.b32.xlu1 %v3745_v63, %s3520_s18 }
 0xaeb   : > { %v1737_v36 = vpop.xlane.xlu1 %1736 }
 0xaec   : > { %v1739_v37 = vsub.f32 %v1729_v31, %v1737_v36  ;;  %v1734_v38 = vpop.xlane.xlu0 %1733 }
 0xaed   : > { %v1738_v39 = vsub.f32 %v1724_v33, %v1734_v38 }
 0xaee   : > { %v1742_v40 = vmul.f32 1.442695, %v1739_v37 }
 0xaef   : > { %v1740_v41 = vmul.f32 1.442695, %v1738_v39  ;;  %v3342_v43 = vpop.permute.xlu1 %3341 }
 0xaf0   : > { %3407 = vpow2.f32 %v1742_v40  ;;  %v3344_v44 = vunpack.i.h.bf16 %v3342_v43  ;;  %v3343_v45 = vunpack.i.l.bf16 %v3342_v43 }
 0xaf1   : > { %3409 = vpow2.f32 %v1740_v41 }
 0xaf2   : > { %v3189_v46 = vpack.c.bf16 %v3344_v44, %v3343_v45 }
 0xaf3   : > { %v1853_v4 = vpop.permute.xlu1 %1852 }
 0xaf4   : > { %3190 = vmatprep.subr.bf16.mxu0 %v3189_v46 }
 0xaf5   : > { %3192 = vmatpush3.bf16.msra.mxu0 %v3189_v46 }
 0xaf7   : > { %v1855_v6 = vpop.permute.xlu1 %1854 }
 0xafa   : > { %v3408_v47 = vpop.eup %3407 }
 0xafb   : > { %v1747_v48 = vsel %vm900_vm8, %v3408_v47, 0.0  ;;  %v3410_v49 = vpop.eup %3409 }
 0xafc   : > { %1748 = vadd.xlane.f32.xlu0 %v1747_v48  ;;  %v1744_v54 = vsel %vm900_vm8, %v3410_v49, 0.0 }
 0xb00   : > { %1745 = vadd.xlane.f32.xlu0 %v1744_v54 }
 0xb16   : > { %3346 = vrot.lane.b32.xlu0 %v3749_v3, %s3521_s25 }
 0xb89   : > { %v1749_v55 = vpop.xlane.xlu0 %1748 }
 0xb8a   : > { %3411 = vrcp.f32 %v1749_v55 }
 0xb8d   : > { %v1746_v56 = vpop.xlane.xlu0 %1745 }
 0xb8e   : > { %3413 = vrcp.f32 %v1746_v56 }
 0xb91   : > { %v3347_v57 = vpop.permute.xlu0 %3346 }
 0xb92   : > { %v3349_v58 = vunpack.i.h.bf16 %v3347_v57  ;;  %v3348_v60 = vunpack.i.l.bf16 %v3347_v57 }
 0xb94   : > { %v3193_v61 = vpack.c.bf16 %v3349_v58, %v3348_v60  ;;  %v3412_v62 = vpop.eup %3411 }
 0xb95   : > { %v1753_v2 = vmul.f32 %v3412_v62, %v3408_v47 }
 0xb96   : > { %3195 = vmatprep.subr.msk.bf16.mxu0 %vm3756_vm7, %v3193_v61 }
 0xb98   : > { %v3414_v0 = vpop.eup %3413 }
 0xb99   : > { %v1751_v1 = vmul.f32 %v3414_v0, %v3410_v49 }
 0xb9b   : > { %3042 = vmatprep.mubr.msk.f32.mxu0 %vm900_vm8, %v1751_v1 }
 0xb9c   : > { %3043 = vmatmul.mubr.msk.f32.vlgmr.msra.gmra.mrb[14].mxu0 %vm900_vm8, %v1753_v2 }
 0xb9d   : > { %3198 = vmatpush3.bf16.xpose.msk.msra.mxu0 %vm3756_vm7, %v3193_v61  ;;  %3049 = vmatprep.mubr.msk.f32.mxu0 %vm816_vm6, %v1853_v4 }
 0xba4   : > { %3050 = vmatmul.mubr.msk.f32.vlgmr.msra.gmra.mrb[16].mxu0 %vm816_vm6, %v1855_v6 }
 0xc6f   : > { %v3898_v7 = vpop.f32.mrb[14].mxu0 }
 0xc70   : > { %v3900_v8 = vpop.f32.mrb[15].mxu0 }
 0xc77   : > { %v3051_v10 = vpop.f32.mrb[16].mxu0 }
 0xc78   : > { %v1940_v12 = vadd.f32 %v3051_v10, %v3774_v11  ;;  %v1934_v13 = vpop.f32.mrb[17].mxu0 }
 0xc79   : > { %v1935_v14 = vadd.f32 %v3774_v11, %v1934_v13 }
 0xc7a   : > { %v1946_v15 = vsel %vm900_vm8, %v1940_v12, -inf }
 0xc7b   : > { %1947 = vmax.xlane.f32.xlu1 %v1946_v15  ;;  %v1943_v16 = vsel %vm900_vm8, %v1935_v14, -inf }
 0xc7c   : > { %1944 = vmax.xlane.f32.xlu0 %v1943_v16 }
 0xc8c   : > { %3351 = vrot.lane.b32.xlu1 %v3751_v5, %s3520_s18  ;;  %s3528_s18 = smov [#allocation3]  }
 0xc90   : > { %2063 = vrot.lane.b32.xlu1 %v3741_v59, %s3522_s27 }
 0xc94   : > { %2065 = vrot.lane.b32.xlu1 %v3745_v63, %s3522_s27 }
 0xd08   : > { %v1948_v17 = vpop.xlane.xlu1 %1947 }
 0xd09   : > { %v1950_v18 = vsub.f32 %v1940_v12, %v1948_v17  ;;  %v1945_v19 = vpop.xlane.xlu0 %1944 }
 0xd0a   : > { %v1949_v20 = vsub.f32 %v1935_v14, %v1945_v19 }
 0xd0b   : > { %v1953_v21 = vmul.f32 1.442695, %v1950_v18 }
 0xd0c   : > { %v1951_v22 = vmul.f32 1.442695, %v1949_v20  ;;  %v3352_v23 = vpop.permute.xlu1 %3351 }
 0xd0d   : > { %3415 = vpow2.f32 %v1953_v21  ;;  %v3354_v24 = vunpack.i.h.bf16 %v3352_v23  ;;  %v3353_v25 = vunpack.i.l.bf16 %v3352_v23 }
 0xd0e   : > { %3417 = vpow2.f32 %v1951_v22 }
 0xd0f   : > { %v3199_v26 = vpack.c.bf16 %v3354_v24, %v3353_v25 }
 0xd10   : > { %v2064_v44 = vpop.permute.xlu1 %2063 }
 0xd11   : > { %3200 = vmatprep.subr.bf16.mxu1 %v3199_v26 }
 0xd12   : > { %3202 = vmatpush3.bf16.msra.mxu1 %v3199_v26 }
 0xd14   : > { %v2066_v45 = vpop.permute.xlu1 %2065 }
 0xd17   : > { %v3416_v27 = vpop.eup %3415 }
 0xd18   : > { %v1958_v30 = vsel %vm900_vm8, %v3416_v27, 0.0  ;;  %v3418_v31 = vpop.eup %3417 }
 0xd19   : > { %1959 = vadd.xlane.f32.xlu0 %v1958_v30  ;;  %v1955_v32 = vsel %vm900_vm8, %v3418_v31, 0.0 }
 0xd1d   : > { %1956 = vadd.xlane.f32.xlu0 %v1955_v32 }
 0xd33   : > { %3356 = vrot.lane.b32.xlu0 %v3749_v3, %s3523_s20 }
 0xda6   : > { %v1960_v33 = vpop.xlane.xlu0 %1959 }
 0xda7   : > { %3419 = vrcp.f32 %v1960_v33 }
 0xdaa   : > { %v1957_v34 = vpop.xlane.xlu0 %1956 }
 0xdab   : > { %3421 = vrcp.f32 %v1957_v34 }
 0xdae   : > { %v3357_v35 = vpop.permute.xlu0 %3356 }
 0xdaf   : > { %v3359_v36 = vunpack.i.h.bf16 %v3357_v35  ;;  %v3358_v37 = vunpack.i.l.bf16 %v3357_v35 }
 0xdb1   : > { %v3203_v38 = vpack.c.bf16 %v3359_v36, %v3358_v37  ;;  %v3420_v39 = vpop.eup %3419 }
 0xdb2   : > { %v1964_v43 = vmul.f32 %v3420_v39, %v3416_v27 }
 0xdb3   : > { %3205 = vmatprep.subr.msk.bf16.mxu1 %vm3756_vm7, %v3203_v38 }
 0xdb5   : > { %v3422_v40 = vpop.eup %3421 }
 0xdb6   : > { %v1962_v41 = vmul.f32 %v3422_v40, %v3418_v31 }
 0xdb8   : > { %3056 = vmatprep.mubr.msk.f32.mxu1 %vm900_vm8, %v1962_v41 }
 0xdb9   : > { %3057 = vmatmul.mubr.msk.f32.vlgmr.msra.gmra.mrb[12].mxu1 %vm900_vm8, %v1964_v43 }
 0xdba   : > { %3208 = vmatpush3.bf16.xpose.msk.msra.mxu1 %vm3756_vm7, %v3203_v38  ;;  %3063 = vmatprep.mubr.msk.f32.mxu1 %vm816_vm6, %v2064_v44 }
 0xdc1   : > { %3064 = vmatmul.mubr.msk.f32.vlgmr.msra.gmra.mrb[14].mxu1 %vm816_vm6, %v2066_v45 }
 0xe8c   : > { %v3924_v46 = vpop.f32.mrb[12].mxu1 }
 0xe8d   : > { %v3926_v47 = vpop.f32.mrb[13].mxu1 }
 0xe94   : > { %v3065_v48 = vpop.f32.mrb[14].mxu1 }
 0xe95   : > { %v2151_v49 = vadd.f32 %v3065_v48, %v3774_v11  ;;  %v2145_v54 = vpop.f32.mrb[15].mxu1 }
 0xe96   : > { %v2146_v55 = vadd.f32 %v3774_v11, %v2145_v54 }
 0xe97   : > { %v2157_v56 = vsel %vm900_vm8, %v2151_v49, -inf }
 0xe98   : > { %2158 = vmax.xlane.f32.xlu1 %v2157_v56  ;;  %v2154_v57 = vsel %vm900_vm8, %v2146_v55, -inf }
 0xe99   : > { %2155 = vmax.xlane.f32.xlu0 %v2154_v57 }
 0xea9   : > { %3361 = vrot.lane.b32.xlu1 %v3751_v5, %s3522_s27  ;;  %s481_s27 = sand.u32 1, %s3499_s30  }
 0xead   : > { %2274 = vrot.lane.b32.xlu1 %v3741_v59, %s3524_s15 }
 0xeb1   : > { %2276 = vrot.lane.b32.xlu1 %v3745_v63, %s3524_s15 }
 0xf25   : > { %v2159_v58 = vpop.xlane.xlu1 %2158 }
 0xf26   : > { %v2161_v60 = vsub.f32 %v2151_v49, %v2159_v58  ;;  %v2156_v61 = vpop.xlane.xlu0 %2155 }
 0xf27   : > { %v2160_v62 = vsub.f32 %v2146_v55, %v2156_v61 }
 0xf28   : > { %v2164_v0 = vmul.f32 1.442695, %v2161_v60 }
 0xf29   : > { %v2162_v1 = vmul.f32 1.442695, %v2160_v62  ;;  %v3362_v2 = vpop.permute.xlu1 %3361  ;;  %v2487_v62 = vld [vmem:[%s4097_s10] sm:$0xff] }
 0xf2a   : > { %3423 = vpow2.f32 %v2164_v0  ;;  %v3364_v4 = vunpack.i.h.bf16 %v3362_v2  ;;  %v3363_v6 = vunpack.i.l.bf16 %v3362_v2  ;;  %v2488_v0 = vld [vmem:[%s4097_s10 + $0x8] sm:$0xff] }
 0xf2b   : > { %3425 = vpow2.f32 %v2162_v1  ;;  %v2489_v1 = vld [vmem:[%s4097_s10 + $0x10] sm:$0xff]  ;;  %v3223_v2 = vpack.c.bf16 %v2488_v0, %v2487_v62 }
 0xf2c   : > { %v3209_v10 = vpack.c.bf16 %v3364_v4, %v3363_v6  ;;  %v2490_v4 = vld [vmem:[%s4097_s10 + $0x18] sm:$0xff] }
 0xf2d   : > { %v2275_v24 = vpop.permute.xlu1 %2274  ;;  %v3227_v6 = vpack.c.bf16 %v2490_v4, %v2489_v1 }
 0xf2e   : > { %3210 = vmatprep.subr.bf16.mxu0 %v3209_v10 }
 0xf2f   : > { %3212 = vmatpush3.bf16.msra.mxu0 %v3209_v10  ;;  %v2491_v10 = vld [vmem:[%s4097_s10 + $0x20] sm:$0xff] }
 0xf34   : > { %v3424_v12 = vpop.eup %3423 }
 0xf35   : > { %v2169_v59 = vsel %vm900_vm8, %v3424_v12, 0.0  ;;  %v3426_v13 = vpop.eup %3425 }
 0xf36   : > { %2170 = vadd.xlane.f32.xlu0 %v2169_v59  ;;  %v2166_v63 = vsel %vm900_vm8, %v3426_v13, 0.0 }
 0xf3a   : > { %2167 = vadd.xlane.f32.xlu0 %v2166_v63  ;;  %v2494_v63 = vld [vmem:[%s4097_s10 + $0x38] sm:$0xff] }
 0xf50   : > { %3366 = vrot.lane.b32.xlu0 %v3749_v3, %s3525_s0  ;;  %v2277_v3 = vpop.permute.xlu1 %2276 }
 0xfc3   : > { %v2171_v14 = vpop.xlane.xlu0 %2170 }
 0xfc4   : > { %3427 = vrcp.f32 %v2171_v14 }
 0xfc7   : > { %v2168_v15 = vpop.xlane.xlu0 %2167 }
 0xfc8   : > { %3429 = vrcp.f32 %v2168_v15 }
 0xfcb   : > { %v3367_v16 = vpop.permute.xlu0 %3366 }
 0xfcc   : > { %v3369_v17 = vunpack.i.h.bf16 %v3367_v16  ;;  %v3368_v18 = vunpack.i.l.bf16 %v3367_v16 }
 0xfce   : > { %v3213_v19 = vpack.c.bf16 %v3369_v17, %v3368_v18  ;;  %v3428_v20 = vpop.eup %3427 }
 0xfcf   : > { %v2175_v23 = vmul.f32 %v3428_v20, %v3424_v12  ;;  %v2492_v12 = vld [vmem:[%s4097_s10 + $0x28] sm:$0xff] }
 0xfd0   : > { %3215 = vmatprep.subr.msk.bf16.mxu0 %vm3756_vm7, %v3213_v19  ;;  %v3231_v59 = vpack.c.bf16 %v2492_v12, %v2491_v10 }
 0xfd2   : > { %v3430_v21 = vpop.eup %3429 }
 0xfd3   : > { %v2173_v22 = vmul.f32 %v3430_v21, %v3426_v13  ;;  %v2493_v13 = vld [vmem:[%s4097_s10 + $0x30] sm:$0xff]  ;;  %v2861_v21 = vld [vmem:[%s4098_s11] ss:$0 sm:$0xff] }
 0xfd4   : > { %v3235_v14 = vpack.c.bf16 %v2494_v63, %v2493_v13 }
 0xfd5   : > { %3070 = vmatprep.mubr.msk.f32.mxu0 %vm900_vm8, %v2173_v22 }
 0xfd6   : > { %3071 = vmatmul.mubr.msk.f32.vlgmr.msra.gmra.mrb[18].mxu0 %vm900_vm8, %v2175_v23 }
 0xfd7   : > { %3218 = vmatpush3.bf16.xpose.msk.msra.mxu0 %vm3756_vm7, %v3213_v19  ;;  %3077 = vmatprep.mubr.msk.f32.mxu0 %vm816_vm6, %v2275_v24 }
 0xfde   : > { %3078 = vmatmul.mubr.msk.f32.vlgmr.msra.gmra.mrb[20].mxu0 %vm816_vm6, %v2277_v3 }
 0xfdf   : > { %3110 = vmatprep.mubr.msk.f32.mxu0 %vm3527_vm0, %v3510_v42 }
0x10a9   : > { %v3072_v25 = vpop.f32.mrb[18].mxu0 }
0x10aa   : > { %v2254_v26 = vpop.f32.mrb[19].mxu0 }
0x10b1   : > { %v3079_v27 = vpop.f32.mrb[20].mxu0 }
0x10b2   : > { %v2362_v30 = vadd.f32 %v3079_v27, %v3774_v11  ;;  %v2356_v31 = vpop.f32.mrb[21].mxu0 }
0x10b3   : > { %v2357_v32 = vadd.f32 %v3774_v11, %v2356_v31 }
0x10b4   : > { %v2368_v33 = vsel %vm900_vm8, %v2362_v30, -inf }
0x10b5   : > { %2369 = vmax.xlane.f32.xlu1 %v2368_v33  ;;  %v2365_v34 = vsel %vm900_vm8, %v2357_v32, -inf }
0x10b6   : > { %2366 = vmax.xlane.f32.xlu0 %v2365_v34 }
0x10c6   : > { %3371 = vrot.lane.b32.xlu1 %v3751_v5, %s3524_s15  ;;  %s482_s15 = scalar_lea.vmem [#allocation3], %s481_s27 }
0x10ca   : > { %1212 = vrot.lane.b32.xlu1 %v3842_v50, %s3525_s0 }
0x10ce   : > { %1421 = vrot.lane.b32.xlu1 %v3848_v53, %s3523_s20 }
0x10d2   : > { %1632 = vrot.lane.b32.xlu1 %v3874_v29, %s3521_s25 }
0x10d6   : > { %1843 = vrot.lane.b32.xlu1 %v3900_v8, %s3519_s3 }
0x10da   : > { %2054 = vrot.lane.b32.xlu1 %v3926_v47, %s3516_s21 }
0x10de   : > { %2265 = vrot.lane.b32.xlu1 %v2254_v26, %s3514_s28 }
0x1142   : > { %v2370_v9 = vpop.xlane.xlu1 %2369 }
0x1143   : > { %v2372_v11 = vsub.f32 %v2362_v30, %v2370_v9  ;;  %v2367_v5 = vpop.xlane.xlu0 %2366 }
0x1144   : > { %v2371_v35 = vsub.f32 %v2357_v32, %v2367_v5 }
0x1145   : > { %v2375_v36 = vmul.f32 1.442695, %v2372_v11 }
0x1146   : > { %v2373_v50 = vmul.f32 1.442695, %v2371_v35  ;;  %v3372_v37 = vpop.permute.xlu1 %3371 }
0x1147   : > { %v3374_v38 = vunpack.i.h.bf16 %v3372_v37  ;;  %v3373_v53 = vunpack.i.l.bf16 %v3372_v37 }
0x1148   : > { %3431 = vpow2.f32 %v2373_v50 }
0x1149   : > { %v3219_v29 = vpack.c.bf16 %v3374_v38, %v3373_v53  ;;  %3433 = vpow2.f32 %v2375_v36  ;;  %v3526_v36 = vmov 0.0|0.0  }
0x114a   : > { %v1213_v39 = vpop.permute.xlu1 %1212  ;;  %3239 = vmatprep.subr.bf16.mxu0 %v3526_v36 }
0x114b   : > { %1218 = vst.msk [vmem:[#allocation2 + $0x8] sm:$0xff] %vm1216_vm9, %v1213_v39  ;;  %3220 = vmatprep.subr.bf16.mxu1 %v3219_v29 }
0x114c   : > { %3222 = vmatpush3.bf16.msra.mxu1 %v3219_v29 }
0x114d   : > { %3224 = vmatprep.subr.bf16.mxu1 %v3223_v2 }
0x114e   : > { %v1422_v44 = vpop.permute.xlu1 %1421 }
0x1152   : > { %v3432_v8 = vpop.eup %3431  ;;  %v1633_v45 = vpop.permute.xlu1 %1632 }
0x1153   : > { %v2377_v40 = vsel %vm900_vm8, %v3432_v8, 0.0  ;;  %v3434_v41 = vpop.eup %3433 }
0x1154   : > { %2378 = vadd.xlane.f32.xlu0 %v2377_v40  ;;  %v2380_v43 = vsel %vm900_vm8, %v3434_v41, 0.0 }
0x1156   : > { %v1844_v48 = vpop.permute.xlu1 %1843 }
0x1158   : > { %2381 = vadd.xlane.f32.xlu0 %v2380_v43  ;;  %v2864_v43 = vld [vmem:[%s4099_s12] ss:$0 sm:$0xff] }
0x115a   : > { %v2055_v49 = vpop.permute.xlu1 %2054 }
0x115e   : > { %v2266_v54 = vpop.permute.xlu1 %2265 }
0x116e   : > { %1210 = vrot.lane.b32.xlu0 %v3844_v51, %s3525_s0  ;;  %s2724_s0 = sshll.u32 %s482_s15, 4  ;;  %s4046_s0 = int_to_ptr.vmem [resolvable:$true] %s2724_s0 }
0x1172   : > { %1423 = vrot.lane.b32.xlu0 %v3846_v52, %s3523_s20  ;;  %s2867_s20 = sshll.u32 %s3625_s17, 4  ;;  %s3445_s17 = scalar_lea.vmem %s4046_s0, 16 }
0x1173   : > { %p3446_p12 = scmp.ne.s32.totalorder %s4046_s0, %s3445_s17 }
0x1175   : > { %p3447_p13 = pnand %p3446_p12, %p3642_p5 }
0x1176   : > { %1634 = vrot.lane.b32.xlu0 %v3872_v28, %s3521_s25 }
0x1177   : > { %p3448_p0 = pneg %p3447_p13 }
0x117a   : > { %1845 = vrot.lane.b32.xlu0 %v3898_v7, %s3519_s3  ;;  %s2712_s3 = scalar_lea.sflag [#allocation4], %s481_s27 }
0x117e   : > { %2056 = vrot.lane.b32.xlu0 %v3924_v46, %s3516_s21  ;;  %s494_s21 = scalar_lea.vmem %s4089_s2, %s3768_s22  ;;  %s3449_s22 = sshll.u32 %s3528_s18, 4  ;;  %s3450_s22 = int_to_ptr.vmem [resolvable:$false] %s3449_s22 }
0x117f   : > { %v2628_v50 = vld [vmem:[%s494_s21] sm:$0x1]  ;;  %s4044_s21 = scalar_lea.hbm %s4101_s14, %s2867_s20  ;;  %s3451_s25 = scalar_lea.vmem %s3450_s22, 32 }
0x1180   : > { %v2703_v37 = vsel %vm2702_vm1, %v2628_v50, 0.0  ;;  %p3452_p1 = scmp.lt.s32.totalorder %s4046_s0, %s3450_s22  ;;  %p3453_p2 = scmp.lt.s32.totalorder %s3451_s25, %s3445_s17 }
0x1182   : > { %2267 = vrot.lane.b32.xlu0 %v3072_v25, %s3514_s28  ;;  %p3454_p3 = por %p3453_p2, %p3452_p1 }
0x1184   : > { %p3455_p4 = pnand %p3454_p3, %p3448_p0 }
0x11e1   : > { %v2379_v47 = vpop.xlane.xlu0 %2378 }
0x11e2   : > { %3435 = vrcp.f32 %v2379_v47  ;;  %v2865_v47 = vld [vmem:[%s4100_s13] ss:$0 sm:$0xff] }
0x11e5   : > { %v2382_v51 = vpop.xlane.xlu0 %2381 }
0x11e6   : > { %3437 = vrcp.f32 %v2382_v51 }
0x11e9   : > { %v1211_v52 = vpop.permute.xlu0 %1210 }
0x11ea   : > { %1217 = vst.msk [vmem:[#allocation2] sm:$0xff] %vm1216_vm9, %v1211_v52 }
0x11eb   : > { %1428 = vst.msk [vmem:[#allocation2] sm:$0xff] %vm1427_vm10, %v1422_v44 }
0x11ec   : > { %v3436_v28 = vpop.eup %3435  ;;  %1639 = vst.msk [vmem:[#allocation2] sm:$0xff] %vm1638_vm11, %v1633_v45 }
0x11ed   : > { %v1424_v7 = vpop.permute.xlu0 %1423  ;;  %v2384_v46 = vmul.f32 %v3436_v28, %v3432_v8  ;;  %1850 = vst.msk [vmem:[#allocation2] sm:$0xff] %vm1849_vm12, %v1844_v48 }
0x11ee   : > { %1429 = vst.msk [vmem:[#allocation2 + $0x8] sm:$0xff] %vm1427_vm10, %v1424_v7 }
0x11ef   : > { %2061 = vst.msk [vmem:[#allocation2] sm:$0xff] %vm2060_vm13, %v2055_v49  ;;  %3084 = vmatprep.mubr.msk.f32.mxu1 %vm900_vm8, %v2384_v46 }
0x11f0   : > { %2272 = vst.msk [vmem:[#allocation2] sm:$0xff] %vm2271_vm14, %v2266_v54  ;;  %v3438_v55 = vpop.eup %3437 }
0x11f1   : > { %v2386_v56 = vmul.f32 %v3438_v55, %v3434_v41  ;;  %v1635_v57 = vpop.permute.xlu0 %1634 }
0x11f2   : > { %1640 = vst.msk [vmem:[#allocation2 + $0x8] sm:$0xff] %vm1638_vm11, %v1635_v57 }
0x11f3   : > { %3085 = vmatmul.mubr.msk.f32.vlgmr.msra.gmra.mrb[16].mxu1 %vm900_vm8, %v2386_v56 }
0x11f4   : > { %3226 = vmatpush3.bf16.msra.mxu1 %v3223_v2 }
0x11f5   : > { %v1846_v58 = vpop.permute.xlu0 %1845  ;;  %3228 = vmatprep.subr.bf16.mxu1 %v3227_v6 }
0x11f6   : > { %1851 = vst.msk [vmem:[#allocation2 + $0x8] sm:$0xff] %vm1849_vm12, %v1846_v58 }
0x11f8   : > { %3230 = vmatpush3.bf16.msra.mxu1 %v3227_v6 }
0x11f9   : > { %v2057_v60 = vpop.permute.xlu0 %2056  ;;  %3232 = vmatprep.subr.bf16.mxu1 %v3231_v59 }
0x11fa   : > { %2062 = vst.msk [vmem:[#allocation2 + $0x8] sm:$0xff] %vm2060_vm13, %v2057_v60 }
0x11fc   : > { %3234 = vmatpush3.bf16.msra.mxu1 %v3231_v59 }
0x11fd   : > { %v2268_v61 = vpop.permute.xlu0 %2267  ;;  %3236 = vmatprep.subr.bf16.mxu1 %v3235_v14 }
0x11fe   : > { %2273 = vst.msk [vmem:[#allocation2 + $0x8] sm:$0xff] %vm2271_vm14, %v2268_v61 }
0x1200   : > { %3238 = vmatpush3.bf16.msra.mxu1 %v3235_v14 }
0x12c6   : > { %v3086_v15 = vpop.f32.mrb[16].mxu1 }
0x12c7   : > { %2478 = vrot.lane.b32.xlu0 %v3086_v15, %s3512_s26  ;;  %v2465_v16 = vpop.f32.mrb[17].mxu1 }
0x12c8   : > { %2476 = vrot.lane.b32.xlu1 %v2465_v16, %s3512_s26 }
0x1339   : > { %v2479_v17 = vpop.permute.xlu0 %2478 }
0x133a   : > { %2484 = vst.msk [vmem:[#allocation2 + $0x8] sm:$0xff] %vm2482_vm15, %v2479_v17  ;;  %v2477_v18 = vpop.permute.xlu1 %2476 }
0x133b   : > { %2483 = vst.msk [vmem:[#allocation2] sm:$0xff] %vm2482_vm15, %v2477_v18 }
0x1341   : > { %v2486_v20 = vld [vmem:[#allocation2 + $0x8] sm:$0xff] }
0x1342   : > { %v2485_v19 = vld [vmem:[#allocation2] sm:$0xff] }
0x1343   : > { %3103 = vmatprep.mubr.msk.f32.mxu1 %vm719_vm5, %v2485_v19 }
0x1344   : > { %3104 = vmatmul.mubr.msk.f32.vlgmr.msra.gmra.mrb[18].mxu1 %vm719_vm5, %v2486_v20 }
0x1417   : > { %v3105_v22 = vpop.f32.mrb[18].mxu1 }
0x1418   : > { %v2580_v23 = vadd.f32 %v3105_v22, %v2861_v21  ;;  %v2574_v24 = vpop.f32.mrb[19].mxu1 }
0x1419   : > { %v2575_v3 = vadd.f32 %v2861_v21, %v2574_v24 }
0x141a   : > { %v2586_v25 = vsel %vm719_vm5, %v2580_v23, 0.0 }
0x141b   : > { %2587 = vadd.xlane.f32.xlu0 %v2586_v25  ;;  %v2583_v26 = vsel %vm719_vm5, %v2575_v3, 0.0 }
0x141c   : > { %2584 = vadd.xlane.f32.xlu1 %v2583_v26 }
0x14a8   : > { %v2588_v27 = vpop.xlane.xlu0 %2587 }
0x14a9   : > { %v2591_v30 = vmul.f32 0.015625, %v2588_v27  ;;  %v2585_v31 = vpop.xlane.xlu1 %2584 }
0x14aa   : > { %v2590_v32 = vmul.f32 0.015625, %v2585_v31 }
0x14ab   : > { %v2593_v33 = vsub.f32 %v2580_v23, %v2591_v30 }
0x14ac   : > { %v2592_v34 = vsub.f32 %v2575_v3, %v2590_v32 }
0x14ad   : > { %v2595_v9 = vmul.f32 %v2593_v33, %v2593_v33 }
0x14ae   : > { %v2594_v11 = vmul.f32 %v2592_v34, %v2592_v34 }
0x14af   : > { %v2599_v5 = vsel %vm719_vm5, %v2595_v9, 0.0 }
0x14b0   : > { %2600 = vadd.xlane.f32.xlu1 %v2599_v5  ;;  %v2596_v35 = vsel %vm719_vm5, %v2594_v11, 0.0 }
0x14b1   : > { %2597 = vadd.xlane.f32.xlu0 %v2596_v35 }
0x14b5   : > { %2704 = vadd.xlane.f32.xlu0 %v2703_v37 }
0x153d   : > { %v2601_v38 = vpop.xlane.xlu1 %2600 }
0x153e   : > { %v2603_v53 = vmul.f32 0.015625, %v2601_v38  ;;  %v2598_v29 = vpop.xlane.xlu0 %2597 }
0x153f   : > { %v2602_v39 = vmul.f32 0.015625, %v2598_v29 }
0x1540   : > { %v2605_v8 = vadd.f32 1e-05, %v2603_v53 }
0x1541   : > { %v2604_v40 = vadd.f32 1e-05, %v2602_v39 }
0x1542   : > { %3439 = vrsqrt.f32 %v2605_v8  ;;  %v2705_v7 = vpop.xlane.xlu0 %2704 }
0x1543   : > { %3441 = vrsqrt.f32 %v2604_v40  ;;  %v2706_v46 = vadd.f32 1e-08, %v2705_v7 }
0x1545   : > { %3443 = vrcp.f32 %v2706_v46 }
0x154c   : > { %v3440_v41 = vpop.eup %3439 }
0x154d   : > { %v3442_v44 = vpop.eup %3441  ;;  %v2609_v42 = vmul.f32 %v3440_v41, %v2593_v33 }
0x154e   : > { %v2608_v45 = vmul.f32 %v3442_v44, %v2592_v34 }
0x154f   : > { %v2618_v48 = vmul.f32 %v2864_v43, %v2609_v42  ;;  %v3444_v54 = vpop.eup %3443 }
0x1550   : > { %v2617_v51 = vmul.f32 %v2864_v43, %v2608_v45 }
0x1551   : > { %v2627_v49 = vadd.f32 %v2865_v47, %v2618_v48 }
0x1552   : > { %v2626_v52 = vadd.f32 %v2865_v47, %v2617_v51 }
0x1554   : > { %v3240_v28 = vpack.c.bf16 %v2627_v49, %v2626_v52 }
0x1556   : > { %3241 = vmatpush3.bf16.msra.mxu0 %v3240_v28 }
0x1559   : > { %3111 = vmatmul.mubr.msk.f32.vlgmr.msra.gmra.mrb[22].mxu0 %vm900_vm8, %v2628_v50 }
0x162c   : > { %v2698_v55 = vpop.f32.mrb[22].mxu0 }
0x162d   : > { %v2708_v56 = vmul.f32 %v3444_v54, %v2698_v55  ;;  %v3112_v57 = vpop.f32.mrb[23].mxu0 }
0x162f   : > { %v2709_v58 = vsel %vm719_vm5, %v2708_v56, 0.0 }
0x1630   : > { %2710 = vst [vmem:[%s482_s15] sm:$0x1] %v2709_v58 }
0x1631   : > { %3458 = shalt.err (!%p3455_p4)
}
0x1632   : > { %s3459_s27 = scalar_lea.hbm %s4044_s21, 16  ;;  %s3463_s26 = scalar_lea.hbm %s4101_s14, 32 }
0x1633   : > { %p3460_p7 = scmp.ne.s32.totalorder %s4044_s21, %s3459_s27  ;;  %p3464_p10 = scmp.lt.u32.totalorder %s4044_s21, %s4101_s14 }
0x1634   : > { %p3465_p11 = scmp.lt.u32.totalorder %s3463_s26, %s3459_s27  ;;  %p3467_p13 = scmp.lt.u32.totalorder %s3459_s27, %s4044_s21 }
0x1635   : > { %p3461_p8 = pnand %p3460_p7, %p3642_p5 }
0x1636   : > { %p3466_p12 = por %p3465_p11, %p3464_p10 }
0x1637   : > { %p3462_p9 = pneg %p3461_p8 }
0x1638   : > { %p3468_p0 = por %p3467_p13, %p3466_p12 }
0x163a   : > { %p3469_p1 = pnand %p3468_p0, %p3462_p9 }
0x163c   : > { %3472 = shalt.err (!%p3469_p1)
}
0x163d   : > { %3242 = dma.vmem_to_hbm [thread:$0]  (%p3642_p5), %s4046_s0, 16, %s4044_s21, %s2712_s3  }
0x163e PF: > { %p3248_p2 = scmp.ge.s32.totalorder %s3507_s16, 2  ;;  %s2736_s17 = sand.u32 1, %s3495_s29  }
0x163f   : > { %s2737_s22 = scalar_lea.sflag [#allocation4], %s2736_s17 }
0x1640   : > { %p3245_p3 = pnand %p3248_p2, %p3646_p6 }
0x1642   : > { %3490 = dma.done.wait (!%p3245_p3), %s2737_s22, 16  }
0x1643   : > { %3492 = vsyncadd (!%p3245_p3), %s2737_s22, 4294967280  ;;  %s4113_s25 = sld [smem:[#allocation6_spill]]  ;;  %s4114_s15 = sld [smem:[#allocation7_spill]] }
0x1644   : > { %p24_p4 = scmp.ge.s32.totalorder %s3629_s19, 4   ;;  %s4115_s29 = smov %s3499_s30 }
0x1645   : > { %s4117_s16 = smov %s3629_s19 }
0x1646   :  { %26 = sbr.rel (!%p24_p4) target bundleno = 6 (0x6), region = 117 }
0x1649   : > { %s4116_s30 = smov %s4113_s25 }
0x164d   :  { %2741 = vsyncpa [#allocation4], 1 }
0x164e   :  { %2743 = vsyncpa [#allocation4 + $0x1], 1 }

</bundles_post_ra>
